<compile_context>
chip_gen: v7x
topology: tpu7x:2x2x1
jax: 0.10.0
libtpu: 0.0.40
codegen_flags: <defaults>
</compile_context>

<pallas_src>
import functools

import jax
import jax.numpy as jnp
from jax.experimental import pallas as pl
from jax.experimental.pallas import tpu as pltpu


def _r8(n):
    return -(-n // 8) * 8


def _slab_layout(F, H1, H2):
    """Row offsets of each segment inside the packed weight slab (8-aligned)."""
    o1 = 0                  # W1T  (H1, F)
    o2 = o1 + _r8(H1)       # W2T  (H2, H1)
    o3 = o2 + _r8(H2)       # W3T  (H1, H2)
    o4 = o3 + _r8(H1)       # W4T  (F,  H1)
    ob = o4 + _r8(F)        # bias block: rows [b1, b2, b3, b4, 0...]
    R = ob + 8
    C = max(F, H1, H2)
    return o1, o2, o3, o4, ob, R, C


def pack_params(params):
    """One-time host-side packing of per-cluster AE params into a dense slab.

    Weights are pre-transposed to (out, in) so in-kernel contractions reduce over
    the lane axis and activations stay lane-major through all four stages.
    Returns (slab, dims) with slab shape (J, R, C) and dims = (J, F, H1, H2).
    """
    W1, b1, W2, b2, W3, b3, W4, b4 = [jnp.asarray(p, jnp.float32) for p in params]
    J, F, H1 = W1.shape
    H2 = W2.shape[-1]
    o1, o2, o3, o4, ob, R, C = _slab_layout(F, H1, H2)

    def seg(w_t, rows):
        j, r, c = w_t.shape
        return jnp.pad(w_t, ((0, 0), (0, rows - r), (0, C - c)))

    bias = jnp.stack(
        [
            jnp.pad(b1, ((0, 0), (0, C - H1))),
            jnp.pad(b2, ((0, 0), (0, C - H2))),
            jnp.pad(b3, ((0, 0), (0, C - H1))),
            jnp.pad(b4, ((0, 0), (0, C - F))),
        ],
        axis=1,
    )  # (J, 4, C)

    slab = jnp.concatenate(
        [
            seg(jnp.swapaxes(W1, 1, 2), o2 - o1),   # (J, r8(H1), C)
            seg(jnp.swapaxes(W2, 1, 2), o3 - o2),   # (J, r8(H2), C)
            seg(jnp.swapaxes(W3, 1, 2), o4 - o3),   # (J, r8(H1), C)
            seg(jnp.swapaxes(W4, 1, 2), ob - o4),   # (J, r8(F),  C)
            jnp.pad(bias, ((0, 0), (0, 8 - 4), (0, 0))),
        ],
        axis=1,
    )
    assert slab.shape == (J, R, C)
    return slab, (J, F, H1, H2)


def _ae_loss_kernel(n_clust, F, H1, H2, o1, o2, o3, o4, ob,
                    i_ref, reg_ref, assign_ref, data_ref, wp_ref,
                    loss_ref, idx_ref):
    """Single invocation: all clusters at once; contractions on the VPU/XLU."""
    reg = reg_ref[0]

    data = data_ref[...]                               # (J+2, F)
    c = data[2:, :]                                    # (J, F)  centers
    x = data[0:1, :] - c                               # (J, F)  X - centers[j]
    xo = data[1:2, :] - c                              # (J, F)  X_out - centers[j]

    # Weights pre-transposed to (J, out, in): static slices of the packed slab.
    w1t = wp_ref[:, o1:o1 + H1, 0:F]                   # (J, H1, F)
    w2t = wp_ref[:, o2:o2 + H2, 0:H1]                  # (J, H2, H1)
    w3t = wp_ref[:, o3:o3 + H1, 0:H2]                  # (J, H1, H2)
    w4t = wp_ref[:, o4:o4 + F, 0:H1]                   # (J, F,  H1)
    bb = wp_ref[:, ob:ob + 8, :]                       # (J, 8, C) bias block
    b1 = bb[:, 0, 0:H1]
    b2 = bb[:, 1, 0:H2]
    b3 = bb[:, 2, 0:H1]
    b4 = bb[:, 3, 0:F]

    def bmv_t(v, wt, b):
        # out[j, n] = sum_k v[j, k] * wt[j, n, k] + b[j, n]
        # v stays lane-major; sublane broadcast + XLU lane-reduce (no lane->sublane
        # relayout of the activation, no <1%-utilized MXU matvecs).
        return jnp.sum(v[:, None, :] * wt, axis=-1) + b

    h1 = bmv_t(x, w1t, b1)        # (J, H1)  enc1 (linear=True: no activation)
    emb = bmv_t(h1, w2t, b2)      # (J, H2)  enc2 == get_embedding(x)
    d1 = bmv_t(emb, w3t, b3)      # (J, H1)  dec1
    rec = bmv_t(d1, w4t, b4)      # (J, F)   dec2

    # Per-cluster loss: MSELoss(reduction='mean') + reg * ||embedding||^2
    diff = rec - xo
    mse = jnp.mean(diff * diff, axis=1, keepdims=True)      # (J, 1)
    emb_sq = jnp.sum(emb * emb, axis=1, keepdims=True)      # (J, 1)
    per = mse + reg * emb_sq                                 # (J, 1)

    # loss = sum_j clust_assign[j, i] * per[j]; column i selected in-kernel.
    i = i_ref[0]
    assign = assign_ref[...]                                 # (J, S)
    sel = jax.lax.broadcasted_iota(jnp.int32, assign.shape, 1) == i
    a_col = jnp.sum(jnp.where(sel, assign, 0.0), axis=1, keepdims=True)  # (J, 1)
    loss_ref[0] = jnp.sum(a_col * per)

    # First-minimum argmin matching the torch `if loss_clust > l` loop:
    # NaNs are never selected; if nothing beats +inf the index stays -1.
    per_clean = jnp.where(per == per, per, jnp.inf)          # NaN -> +inf
    m = jnp.min(per_clean)
    jidx = jax.lax.broadcasted_iota(jnp.int32, per.shape, 0)
    first = jnp.min(jnp.where(per_clean == m, jidx, jnp.int32(n_clust)))
    idx_ref[0] = jnp.where(m < jnp.inf, first, jnp.int32(-1))


@functools.partial(jax.jit, static_argnames=("dims",))
def tensorised_ae_loss(X, centers, i, clust_assign, wpack, reg, dims, X_out=None):
    """Returns (loss, loss_clust_idx) matching the PyTorch module (CNN=False).

    `wpack, dims = pack_params(params)` must be computed once beforehand.
    """
    J, F, H1, H2 = dims
    o1, o2, o3, o4, ob, R, C = _slab_layout(F, H1, H2)

    x2d = jnp.asarray(X, jnp.float32).reshape(1, F)
    xo2d = x2d if X_out is None else jnp.asarray(X_out, jnp.float32).reshape(1, F)
    data = jnp.concatenate(
        [x2d, xo2d, jnp.asarray(centers, jnp.float32)], axis=0)      # (J+2, F)

    assign = jnp.asarray(clust_assign, jnp.float32)                   # (J, S)
    i_arr = jnp.reshape(jnp.asarray(i, jnp.int32), (1,))
    reg_arr = jnp.reshape(jnp.asarray(reg, jnp.float32), (1,))

    flops = 2 * J * (F * H1 + H1 * H2 + H2 * H1 + H1 * F) + 8 * J * F
    bytes_accessed = 4 * (data.size + assign.size + wpack.size) + 16

    kernel = functools.partial(_ae_loss_kernel, J, F, H1, H2, o1, o2, o3, o4, ob)
    smem = pl.BlockSpec(memory_space=pltpu.SMEM)
    vmem = pl.BlockSpec(memory_space=pltpu.VMEM)

    loss, idx = pl.pallas_call(
        kernel,
        out_shape=(jax.ShapeDtypeStruct((1,), jnp.float32),
                   jax.ShapeDtypeStruct((1,), jnp.int32)),
        in_specs=[smem,       # i       (1,) int32
                  smem,       # reg     (1,) f32
                  vmem,       # assign  (J, S)
                  vmem,       # data    (J+2, F)
                  vmem],      # wpack   (J, R, C)
        out_specs=(smem, smem),
        cost_estimate=pl.CostEstimate(flops=int(flops), transcendentals=0,
                                      bytes_accessed=int(bytes_accessed)),
    )(i_arr, reg_arr, assign, data, wpack)

    return loss[0], idx[0]


def init_params(key, n_clust, in_feature, embed_l):
    """Deterministic init of stacked per-cluster linear-autoencoder params."""
    h1, h2 = embed_l
    ks = jax.random.split(key, 8)
    scale = 0.1
    W1 = scale * jax.random.normal(ks[0], (n_clust, in_feature, h1), jnp.float32)
    b1 = scale * jax.random.normal(ks[1], (n_clust, h1), jnp.float32)
    W2 = scale * jax.random.normal(ks[2], (n_clust, h1, h2), jnp.float32)
    b2 = scale * jax.random.normal(ks[3], (n_clust, h2), jnp.float32)
    W3 = scale * jax.random.normal(ks[4], (n_clust, h2, h1), jnp.float32)
    b3 = scale * jax.random.normal(ks[5], (n_clust, h1), jnp.float32)
    W4 = scale * jax.random.normal(ks[6], (n_clust, h1, in_feature), jnp.float32)
    b4 = scale * jax.random.normal(ks[7], (n_clust, in_feature), jnp.float32)
    return (W1, b1, W2, b2, W3, b3, W4, b4)


if __name__ == "__main__":
    key = jax.random.PRNGKey(0)
    in_feature = 32
    embed_l = (16, 8)
    num_clusters = 2
    num_samples = 8
    reg = 0.01
    i = 3

    k_x, k_c, k_a, k_p = jax.random.split(key, 4)
    X = jax.random.normal(k_x, (in_feature,), jnp.float32)
    centers = jax.random.normal(k_c, (num_clusters, in_feature), jnp.float32)
    clust_assign = jax.nn.softmax(
        jax.random.normal(k_a, (num_clusters, num_samples), jnp.float32), axis=0)
    params = init_params(k_p, num_clusters, in_feature, embed_l)

    # One-time host-side packing of the per-cluster AE parameters.
    wpack, dims = pack_params(params)
    wpack = jax.block_until_ready(wpack)

    loss, idx = tensorised_ae_loss(X, centers, i, clust_assign, wpack, reg, dims=dims)
    loss = jax.block_until_ready(loss)
    idx = jax.block_until_ready(idx)

    # Sanity check against a pure-JAX reference of the same math (unpacked params).
    def ref():
        W1, b1, W2, b2, W3, b3, W4, b4 = params
        ls = []
        for j in range(num_clusters):
            x = (X - centers[j]).reshape(1, -1)
            emb = (x @ W1[j] + b1[j]) @ W2[j] + b2[j]
            recon = (emb @ W3[j] + b3[j]) @ W4[j] + b4[j]
            l = jnp.mean((recon - x) ** 2) + reg * jnp.sum(emb ** 2)
            ls.append(l)
        ls = jnp.stack(ls)
        return jnp.sum(clust_assign[:, i] * ls), jnp.argmin(ls)

    ref_loss, ref_idx = ref()
    assert jnp.allclose(loss, ref_loss, rtol=1e-5, atol=1e-5), (loss, ref_loss)
    assert int(idx) == int(ref_idx), (int(idx), int(ref_idx))

    print("KERNEL_OK")
</pallas_src>

<mosaic_0001>
module attributes {stable_mosaic.version = 11 : i64} {
  func.func @_ae_loss_kernel(%arg0: memref<1xi32, #tpu.memory_space<smem>>, %arg1: memref<1xf32, #tpu.memory_space<smem>>, %arg2: memref<2x8xf32, #tpu.memory_space<vmem>>, %arg3: memref<4x32xf32, #tpu.memory_space<vmem>>, %arg4: memref<2x80x32xf32, #tpu.memory_space<vmem>>, %arg5: memref<1xf32, #tpu.memory_space<smem>>, %arg6: memref<1xi32, #tpu.memory_space<smem>>) attributes {dimension_semantics = [], scalar_prefetch = 0 : i64, scratch_operands = 0 : i64, tpu.core_type = #tpu.core_type<tc>} {
    %c0 = arith.constant 0 : index
    %0 = memref.load %arg1[%c0] : memref<1xf32, #tpu.memory_space<smem>>
    %c0_0 = arith.constant 0 : index
    %c0_1 = arith.constant 0 : index
    %1 = vector.load %arg3[%c0_0, %c0_1] : memref<4x32xf32, #tpu.memory_space<vmem>>, vector<4x32xf32>
    %2 = vector.extract_strided_slice %1 {offsets = [2, 0], sizes = [2, 32], strides = [1, 1]} : vector<4x32xf32> to vector<2x32xf32>
    %3 = vector.extract_strided_slice %1 {offsets = [0, 0], sizes = [1, 32], strides = [1, 1]} : vector<4x32xf32> to vector<1x32xf32>
    %4 = vector.broadcast %3 : vector<1x32xf32> to vector<2x32xf32>
    %5 = arith.subf %4, %2 : vector<2x32xf32>
    %6 = vector.extract_strided_slice %1 {offsets = [1, 0], sizes = [1, 32], strides = [1, 1]} : vector<4x32xf32> to vector<1x32xf32>
    %7 = vector.broadcast %6 : vector<1x32xf32> to vector<2x32xf32>
    %8 = arith.subf %7, %2 : vector<2x32xf32>
    %c0_2 = arith.constant 0 : index
    %c0_3 = arith.constant 0 : index
    %c0_4 = arith.constant 0 : index
    %9 = vector.load %arg4[%c0_2, %c0_3, %c0_4] : memref<2x80x32xf32, #tpu.memory_space<vmem>>, vector<2x16x32xf32>
    %c0_5 = arith.constant 0 : index
    %c16 = arith.constant 16 : index
    %c0_6 = arith.constant 0 : index
    %10 = vector.load %arg4[%c0_5, %c16, %c0_6] : memref<2x80x32xf32, #tpu.memory_space<vmem>>, vector<2x8x16xf32>
    %c0_7 = arith.constant 0 : index
    %c24 = arith.constant 24 : index
    %c0_8 = arith.constant 0 : index
    %11 = vector.load %arg4[%c0_7, %c24, %c0_8] : memref<2x80x32xf32, #tpu.memory_space<vmem>>, vector<2x16x8xf32>
    %c0_9 = arith.constant 0 : index
    %c40 = arith.constant 40 : index
    %c0_10 = arith.constant 0 : index
    %12 = vector.load %arg4[%c0_9, %c40, %c0_10] : memref<2x80x32xf32, #tpu.memory_space<vmem>>, vector<2x32x16xf32>
    %c0_11 = arith.constant 0 : index
    %c72 = arith.constant 72 : index
    %c0_12 = arith.constant 0 : index
    %13 = vector.load %arg4[%c0_11, %c72, %c0_12] : memref<2x80x32xf32, #tpu.memory_space<vmem>>, vector<2x8x32xf32>
    %14 = vector.extract_strided_slice %13 {offsets = [0, 0, 0], sizes = [2, 1, 16], strides = [1, 1, 1]} : vector<2x8x32xf32> to vector<2x1x16xf32>
    %15 = vector.shape_cast %14 : vector<2x1x16xf32> to vector<2x16xf32>
    %16 = vector.extract_strided_slice %13 {offsets = [0, 1, 0], sizes = [2, 1, 8], strides = [1, 1, 1]} : vector<2x8x32xf32> to vector<2x1x8xf32>
    %17 = vector.shape_cast %16 : vector<2x1x8xf32> to vector<2x8xf32>
    %18 = vector.extract_strided_slice %13 {offsets = [0, 2, 0], sizes = [2, 1, 16], strides = [1, 1, 1]} : vector<2x8x32xf32> to vector<2x1x16xf32>
    %19 = vector.shape_cast %18 : vector<2x1x16xf32> to vector<2x16xf32>
    %20 = vector.extract_strided_slice %13 {offsets = [0, 3, 0], sizes = [2, 1, 32], strides = [1, 1, 1]} : vector<2x8x32xf32> to vector<2x1x32xf32>
    %21 = vector.shape_cast %20 : vector<2x1x32xf32> to vector<2x32xf32>
    %22 = vector.shape_cast %5 : vector<2x32xf32> to vector<2x1x32xf32>
    %23 = vector.broadcast %22 : vector<2x1x32xf32> to vector<2x16x32xf32>
    %24 = arith.mulf %23, %9 : vector<2x16x32xf32>
    %cst = arith.constant dense<0.000000e+00> : vector<2x16xf32>
    %25 = vector.multi_reduction <add>, %24, %cst [2] : vector<2x16x32xf32> to vector<2x16xf32>
    %26 = arith.addf %25, %15 : vector<2x16xf32>
    %27 = vector.shape_cast %26 : vector<2x16xf32> to vector<2x1x16xf32>
    %28 = vector.broadcast %27 : vector<2x1x16xf32> to vector<2x8x16xf32>
    %29 = arith.mulf %28, %10 : vector<2x8x16xf32>
    %cst_13 = arith.constant dense<0.000000e+00> : vector<2x8xf32>
    %30 = vector.multi_reduction <add>, %29, %cst_13 [2] : vector<2x8x16xf32> to vector<2x8xf32>
    %31 = arith.addf %30, %17 : vector<2x8xf32>
    %32 = vector.shape_cast %31 : vector<2x8xf32> to vector<2x1x8xf32>
    %33 = vector.broadcast %32 : vector<2x1x8xf32> to vector<2x16x8xf32>
    %34 = arith.mulf %33, %11 : vector<2x16x8xf32>
    %cst_14 = arith.constant dense<0.000000e+00> : vector<2x16xf32>
    %35 = vector.multi_reduction <add>, %34, %cst_14 [2] : vector<2x16x8xf32> to vector<2x16xf32>
    %36 = arith.addf %35, %19 : vector<2x16xf32>
    %37 = vector.shape_cast %36 : vector<2x16xf32> to vector<2x1x16xf32>
    %38 = vector.broadcast %37 : vector<2x1x16xf32> to vector<2x32x16xf32>
    %39 = arith.mulf %38, %12 : vector<2x32x16xf32>
    %cst_15 = arith.constant dense<0.000000e+00> : vector<2x32xf32>
    %40 = vector.multi_reduction <add>, %39, %cst_15 [2] : vector<2x32x16xf32> to vector<2x32xf32>
    %41 = arith.addf %40, %21 : vector<2x32xf32>
    %42 = arith.subf %41, %8 : vector<2x32xf32>
    %43 = arith.mulf %42, %42 : vector<2x32xf32>
    %cst_16 = arith.constant dense<0.000000e+00> : vector<2xf32>
    %44 = vector.multi_reduction <add>, %43, %cst_16 [1] : vector<2x32xf32> to vector<2xf32>
    %45 = vector.shape_cast %44 : vector<2xf32> to vector<2x1xf32>
    %cst_17 = arith.constant 3.200000e+01 : f32
    %46 = vector.broadcast %cst_17 : f32 to vector<2x1xf32>
    %47 = arith.divf %45, %46 : vector<2x1xf32>
    %48 = arith.mulf %31, %31 : vector<2x8xf32>
    %cst_18 = arith.constant dense<0.000000e+00> : vector<2xf32>
    %49 = vector.multi_reduction <add>, %48, %cst_18 [1] : vector<2x8xf32> to vector<2xf32>
    %50 = vector.shape_cast %49 : vector<2xf32> to vector<2x1xf32>
    %51 = vector.broadcast %0 : f32 to vector<2x1xf32>
    %52 = arith.mulf %51, %50 : vector<2x1xf32>
    %53 = arith.addf %47, %52 : vector<2x1xf32>
    %c0_19 = arith.constant 0 : index
    %54 = memref.load %arg0[%c0_19] : memref<1xi32, #tpu.memory_space<smem>>
    %c0_20 = arith.constant 0 : index
    %c0_21 = arith.constant 0 : index
    %55 = vector.load %arg2[%c0_20, %c0_21] : memref<2x8xf32, #tpu.memory_space<vmem>>, vector<2x8xf32>
    %56 = tpu.iota {dimensions = array<i32: 1>} : vector<2x8xi32>
    %57 = vector.broadcast %54 : i32 to vector<2x8xi32>
    %58 = arith.cmpi eq, %56, %57 : vector<2x8xi32>
    %cst_22 = arith.constant 0.000000e+00 : f32
    %59 = vector.broadcast %cst_22 : f32 to vector<2x8xf32>
    %60 = arith.select %58, %55, %59 : vector<2x8xi1>, vector<2x8xf32>
    %cst_23 = arith.constant dense<0.000000e+00> : vector<2xf32>
    %61 = vector.multi_reduction <add>, %60, %cst_23 [1] : vector<2x8xf32> to vector<2xf32>
    %62 = vector.shape_cast %61 : vector<2xf32> to vector<2x1xf32>
    %63 = arith.mulf %62, %53 : vector<2x1xf32>
    %64 = vector.shape_cast %63 : vector<2x1xf32> to vector<1x2x1xf32>
    %cst_24 = arith.constant dense<0.000000e+00> : vector<1xf32>
    %65 = vector.multi_reduction <add>, %64, %cst_24 [1, 2] : vector<1x2x1xf32> to vector<1xf32>
    %66 = vector.shape_cast %65 : vector<1xf32> to vector<1x1x1xf32>
    %67 = vector.extract %66[0, 0, 0] : f32 from vector<1x1x1xf32>
    %c0_25 = arith.constant 0 : index
    %68 = memref.load %arg5[%c0_25] : memref<1xf32, #tpu.memory_space<smem>>
    memref.store %67, %arg5[%c0_25] : memref<1xf32, #tpu.memory_space<smem>>
    %69 = arith.cmpf oeq, %53, %53 : vector<2x1xf32>
    %cst_26 = arith.constant 0x7F800000 : f32
    %70 = vector.broadcast %cst_26 : f32 to vector<2x1xf32>
    %71 = arith.select %69, %53, %70 : vector<2x1xi1>, vector<2x1xf32>
    %72 = vector.shape_cast %71 : vector<2x1xf32> to vector<1x2x1xf32>
    %cst_27 = arith.constant dense<0x7F800000> : vector<1xf32>
    %73 = vector.multi_reduction <minimumf>, %72, %cst_27 [1, 2] : vector<1x2x1xf32> to vector<1xf32>
    %74 = vector.shape_cast %73 : vector<1xf32> to vector<1x1x1xf32>
    %75 = vector.extract %74[0, 0, 0] : f32 from vector<1x1x1xf32>
    %76 = tpu.iota {dimensions = array<i32: 0>} : vector<2x1xi32>
    %77 = vector.broadcast %75 : f32 to vector<2x1xf32>
    %78 = arith.cmpf oeq, %71, %77 : vector<2x1xf32>
    %c2_i32 = arith.constant 2 : i32
    %79 = vector.broadcast %c2_i32 : i32 to vector<2x1xi32>
    %80 = arith.select %78, %76, %79 : vector<2x1xi1>, vector<2x1xi32>
    %81 = vector.shape_cast %80 : vector<2x1xi32> to vector<1x2x1xi32>
    %cst_28 = arith.constant dense<2147483647> : vector<1xi32>
    %82 = vector.multi_reduction <minsi>, %81, %cst_28 [1, 2] : vector<1x2x1xi32> to vector<1xi32>
    %83 = vector.shape_cast %82 : vector<1xi32> to vector<1x1x1xi32>
    %84 = vector.extract %83[0, 0, 0] : i32 from vector<1x1x1xi32>
    %cst_29 = arith.constant 0x7F800000 : f32
    %85 = arith.cmpf olt, %75, %cst_29 : f32
    %c-1_i32 = arith.constant -1 : i32
    %86 = arith.select %85, %84, %c-1_i32 : i32
    %c0_30 = arith.constant 0 : index
    %87 = memref.load %arg6[%c0_30] : memref<1xi32, #tpu.memory_space<smem>>
    memref.store %86, %arg6[%c0_30] : memref<1xi32, #tpu.memory_space<smem>>
    return
  }
}

</mosaic_0001>

<bundles_post_ra>
// kernel: tensorised_ae_loss.1
= control target key start
LH: loop header
LB: loop body
LE: loop exit
PB: predicated region body
PF: predicated region fallthrough
CT: control target
= control target key end

     0   :  { %14 = vsyncpa [#allocation5], 0  ;;  %v28_v0 = vlaneseq  ;;  %v3818_v1 = vmov 1966171168   ;;  %s5580_s0 = inlined_call_operand.<no memory space> [shape: s32[1], index: 0, kind: input, shape index: {}]   ;;  %s5581_s1 = inlined_call_operand.<no memory space> [shape: f32[1], index: 1, kind: input, shape index: {}]   ;;  %s5582_s2 = inlined_call_operand.vmem [shape: f32[2,8], index: 2, kind: input, shape index: {}]   ;;  %s5583_s3 = inlined_call_operand.vmem [shape: f32[4,32], index: 3, kind: input, shape index: {}]   ;;  %s5584_s4 = inlined_call_operand.vmem [shape: f32[2,80,32], index: 4, kind: input, shape index: {}]   ;;  %s5585_s5 = inlined_call_operand.hbm [shape: f32[1], index: 5, kind: output, shape index: {0}]   ;;  %s5586_s6 = inlined_call_operand.hbm [shape: s32[1], index: 6, kind: output, shape index: {1}]  }
   0x1   :  { %v60_v2 = vunpack.c.l.s4 %v3818_v1  ;;  %v3863_v4 = vld [vmem:[%s5584_s4 + $0x48] sm:$0xff]  ;;  %v27_v5 = vld [vmem:[%s5583_s3] sm:$0xf] }
   0x2   :  { %v3858_v3 = vshrl.u32 %v28_v0, 7 }
   0x3   :  { %v61_v6 = vunpack.c.0.s8 %v60_v2 }
   0x4   :  { %5601 = vst [vmem:[#allocation10_spill] sm:$0xff] %v3858_v3 }
   0x5   :  { %15 = vsyncpa [#allocation7], 0  ;;  %v3869_v7 = vsub.s32 0, %v3858_v3  ;;  %v64_v10 = vsub.s32 %v61_v6, %v3858_v3  ;;  %v38_v15 = vld [vmem:[%s5584_s4] sm:$0xff]  ;;  %v39_v16 = vld [vmem:[%s5584_s4 + $0x8] sm:$0xff]  ;;  %vm97_vm0 = vcmask 261120  }
   0x6   :  { %v40_v26 = vld [vmem:[%s5584_s4 + $0x50] sm:$0xff]  ;;  %v41_v28 = vld [vmem:[%s5584_s4 + $0x58] sm:$0xff]  ;;  %v3898_v34 = vsub.s32 1, %v3858_v3  ;;  %v3902_v36 = vsub.s32 2, %v3858_v3  ;;  %v3906_v38 = vsub.s32 3, %v3858_v3  ;;  %v3915_v41 = vsub.s32 4, %v3858_v3 }
   0x7   :  { %v115_v8 = vrot.slane %v3863_v4, %v3869_v7  ;;  %v31_v9 = vrot.slane %v27_v5, %v3869_v7  ;;  %v42_v31 = vld [vmem:[%s5584_s4 + $0x10] sm:$0xff]  ;;  %v3911_v39 = vld [vmem:[%s5584_s4 + $0x98] sm:$0xff]  ;;  %v3921_v44 = vsub.s32 5, %v3858_v3  ;;  %v3819_v45 = vmov 0   ;;  %v43_v51 = vld [vmem:[%s5584_s4 + $0x60] sm:$0xff]  ;;  %s3794_s26 = scalar_lea.hbm %s5585_s5, 16 }
   0x8   :  { %v147_v33 = vrot.slane %v42_v31, %v3869_v7  ;;  %5602 = vst [vmem:[#allocation11_spill] sm:$0xff] %v3898_v34  ;;  %v158_v35 = vrot.slane %v42_v31, %v3898_v34  ;;  %5603 = vst [vmem:[#allocation12_spill] sm:$0xff] %v3902_v36  ;;  %v169_v37 = vrot.slane %v42_v31, %v3902_v36  ;;  %3789 = vset.pattern.permute.xlu0 %v3819_v45  ;;  %vm523_vm1 = vcmask 130112   ;;  %p3795_p0 = scmp.ne.s32.totalorder %s5585_s5, %s3794_s26  ;;  %p3798_p1 = scmp.lt.u32.totalorder %s3794_s26, %s5585_s5 }
   0x9   :  { %121 = vbcast.lane.b32.xlu1 %v115_v8, 264  ;;  %v32_v11 = vsub.f32 %v31_v9, %v27_v5  ;;  %5604 = vst [vmem:[#allocation13_spill] sm:$0xff] %v3906_v38  ;;  %v180_v40 = vrot.slane %v42_v31, %v3906_v38  ;;  %v126_v42 = vrot.slane %v3911_v39, %v3869_v7  ;;  %v3925_v47 = vsub.s32 6, %v3858_v3 }
   0xa   :  { %v191_v43 = vrot.slane %v42_v31, %v3915_v41  ;;  %3790 = vset.pattern.permute.xlu1 %v3819_v45  ;;  %v202_v46 = vrot.slane %v42_v31, %v3921_v44  ;;  %v3929_v49 = vsub.s32 7, %v3858_v3  ;;  %v235_v52 = vrot.slane %v43_v51, %v3869_v7  ;;  %p3800_p2 = pnand %p3798_p1, %p3795_p0 }
   0xb   :  { %v65_v12 = vrot.slane %v32_v11, %v64_v10  ;;  %v213_v48 = vrot.slane %v42_v31, %v3925_v47  ;;  %v246_v53 = vrot.slane %v43_v51, %v3898_v34  ;;  %v257_v54 = vrot.slane %v43_v51, %v3902_v36 }
   0xc   :  { %v224_v50 = vrot.slane %v42_v31, %v3929_v49  ;;  %v268_v55 = vrot.slane %v43_v51, %v3906_v38  ;;  %v279_v56 = vrot.slane %v43_v51, %v3915_v41  ;;  %v290_v57 = vrot.slane %v43_v51, %v3921_v44 }
   0xd   :  { %v73_v13 = vrot.slane %v65_v12, %v64_v10  ;;  %v66_v21 = vcombine.high %v65_v12, %v65_v12  ;;  %v301_v58 = vrot.slane %v43_v51, %v3925_v47  ;;  %v312_v59 = vrot.slane %v43_v51, %v3929_v49 }
   0xe   :  { %vm660_vm2 = vcmask 1041409   ;;  %vm662_vm3 = vcmask 1042434   ;;  %vm664_vm4 = vcmask 1043459   ;;  %vm666_vm5 = vcmask 1044484  }
   0xf   :  { %v81_v14 = vcombine.high %v73_v13, %v73_v13  ;;  %v80_v23 = vrot.slane %v66_v21, %v64_v10  ;;  %vm668_vm6 = vcmask 1045509   ;;  %vm670_vm7 = vcmask 1046534  }
  0x10   :  { %vm672_vm8 = vcmask 1047559   ;;  %vm683_vm9 = vcmask 130048   ;;  %vm1288_vm10 = vcmask 64512   ;;  %vm3638_vm11 = vcmask 195712  }
  0x11   :  { %v86_v17 = vrot.slane %v81_v14, %v3869_v7  ;;  %v82_v24 = vcombine.high %v80_v23, %v80_v23  ;;  %vm3645_vm12 = vcmask 261312   ;;  %vm3668_vm13 = vcmask 254976  }
  0x12   :  { %vm3694_vm14 = vcmask 58368  }
  0x13   :  { %v93_v18 = vmul.f32 %v86_v17, %v38_v15  ;;  %v94_v19 = vmul.f32 %v86_v17, %v39_v16  ;;  %v90_v25 = vrot.slane %v82_v24, %v3869_v7 }
  0x15   :  { %v98_v20 = vsel %vm97_vm0, %v93_v18, 0.0  ;;  %v101_v22 = vsel %vm97_vm0, %v94_v19, 0.0  ;;  %v95_v27 = vmul.f32 %v90_v25, %v40_v26  ;;  %v96_v30 = vmul.f32 %v90_v25, %v41_v28 }
  0x16   :  { %99 = vadd.xlane.f32.xlu0 %v98_v20 }
  0x17   :  { %v104_v29 = vsel %vm97_vm0, %v95_v27, 0.0  ;;  %v107_v32 = vsel %vm97_vm0, %v96_v30, 0.0  ;;  %vm3710_vm0 = vcmask 1024  }
  0x1a   :  { %102 = vadd.xlane.f32.xlu0 %v101_v22 }
  0x2d   :  { %105 = vadd.xlane.f32.xlu1 %v104_v29 }
  0x30   :  { %117 = vbcast.lane.b32.xlu0 %v115_v8, 256 }
  0x31   :  { %108 = vadd.xlane.f32.xlu1 %v107_v32 }
  0x34   :  { %149 = vbcast.lane.b32.xlu0 %v147_v33, 256 }
  0x38   :  { %160 = vbcast.lane.b32.xlu0 %v158_v35, 256 }
  0x3c   :  { %171 = vbcast.lane.b32.xlu0 %v169_v37, 256 }
  0x40   :  { %182 = vbcast.lane.b32.xlu0 %v180_v40, 256 }
  0x42   :  { %128 = vbcast.lane.b32.xlu1 %v126_v42, 256 }
  0x44   :  { %193 = vbcast.lane.b32.xlu0 %v191_v43, 256 }
  0x46   :  { %132 = vbcast.lane.b32.xlu1 %v126_v42, 264 }
  0x48   :  { %204 = vbcast.lane.b32.xlu0 %v202_v46, 256 }
  0x4a   :  { %153 = vbcast.lane.b32.xlu1 %v147_v33, 264 }
  0x4c   :  { %215 = vbcast.lane.b32.xlu0 %v213_v48, 256 }
  0x4e   :  { %164 = vbcast.lane.b32.xlu1 %v158_v35, 264 }
  0x50   :  { %226 = vbcast.lane.b32.xlu0 %v224_v50, 256 }
  0x52   :  { %175 = vbcast.lane.b32.xlu1 %v169_v37, 264 }
  0x54   :  { %237 = vbcast.lane.b32.xlu0 %v235_v52, 256 }
  0x56   :  { %186 = vbcast.lane.b32.xlu1 %v180_v40, 264 }
  0x58   :  { %248 = vbcast.lane.b32.xlu0 %v246_v53, 256 }
  0x5a   :  { %197 = vbcast.lane.b32.xlu1 %v191_v43, 264 }
  0x5c   :  { %259 = vbcast.lane.b32.xlu0 %v257_v54, 256 }
  0x5e   :  { %208 = vbcast.lane.b32.xlu1 %v202_v46, 264 }
  0x60   :  { %270 = vbcast.lane.b32.xlu0 %v268_v55, 256 }
  0x62   :  { %219 = vbcast.lane.b32.xlu1 %v213_v48, 264 }
  0x64   :  { %281 = vbcast.lane.b32.xlu0 %v279_v56, 256 }
  0x66   :  { %230 = vbcast.lane.b32.xlu1 %v224_v50, 264 }
  0x68   :  { %292 = vbcast.lane.b32.xlu0 %v290_v57, 256 }
  0x6a   :  { %241 = vbcast.lane.b32.xlu1 %v235_v52, 264 }
  0x6c   :  { %303 = vbcast.lane.b32.xlu0 %v301_v58, 256 }
  0x6e   :  { %252 = vbcast.lane.b32.xlu1 %v246_v53, 264 }
  0x70   :  { %314 = vbcast.lane.b32.xlu0 %v312_v59, 256 }
  0x72   :  { %263 = vbcast.lane.b32.xlu1 %v257_v54, 264 }
  0x76   :  { %274 = vbcast.lane.b32.xlu1 %v268_v55, 264 }
  0x7a   :  { %285 = vbcast.lane.b32.xlu1 %v279_v56, 264 }
  0x7b   :  { %v122_v6 = vpop.permute.xlu1 %121 }
  0x7e   :  { %296 = vbcast.lane.b32.xlu1 %v290_v57, 264 }
  0x82   :  { %307 = vbcast.lane.b32.xlu1 %v301_v58, 264 }
  0x86   :  { %318 = vbcast.lane.b32.xlu1 %v312_v59, 264 }
  0xa3   :  { %v100_v60 = vpop.xlane.xlu0 %99 }
  0xa7   :  { %v103_v61 = vpop.xlane.xlu0 %102 }
  0xa8   :  { %v139_v16 = vadd.f32 %v122_v6, %v103_v61 }
  0xab   :  { %v118_v62 = vpop.permute.xlu0 %117 }
  0xac   :  { %v138_v63 = vadd.f32 %v118_v62, %v100_v60 }
  0xaf   :  { %v150_v1 = vpop.permute.xlu0 %149 }
  0xb0   :  { %v352_v2 = vmul.f32 %v150_v1, %v138_v63 }
  0xb2   :  { %417 = vperm.xlu0 %3789, %v352_v2  }
  0xb3   :  { %v161_v5 = vpop.permute.xlu0 %160 }
  0xb4   :  { %v354_v21 = vmul.f32 %v161_v5, %v138_v63 }
  0xb7   :  { %v172_v8 = vpop.permute.xlu0 %171 }
  0xb8   :  { %v356_v24 = vmul.f32 %v172_v8, %v138_v63 }
  0xba   :  { %v106_v9 = vpop.xlane.xlu1 %105 }
  0xbb   :  { %v183_v10 = vpop.permute.xlu0 %182 }
  0xbc   :  { %v358_v28 = vmul.f32 %v183_v10, %v138_v63 }
  0xbe   :  { %v109_v11 = vpop.xlane.xlu1 %108 }
  0xbf   :  { %v194_v12 = vpop.permute.xlu0 %193 }
  0xc0   :  { %v360_v32 = vmul.f32 %v194_v12, %v138_v63 }
  0xc2   :  { %v129_v13 = vpop.permute.xlu1 %128 }
  0xc3   :  { %v205_v15 = vpop.permute.xlu0 %204  ;;  %v140_v53 = vadd.f32 %v129_v13, %v106_v9 }
  0xc4   :  { %v362_v37 = vmul.f32 %v205_v15, %v138_v63 }
  0xc6   :  { %v133_v14 = vpop.permute.xlu1 %132 }
  0xc7   :  { %v216_v19 = vpop.permute.xlu0 %215  ;;  %v141_v54 = vadd.f32 %v133_v14, %v109_v11 }
  0xc8   :  { %v364_v45 = vmul.f32 %v216_v19, %v138_v63 }
  0xca   :  { %v154_v17 = vpop.permute.xlu1 %153 }
  0xcb   :  { %v353_v18 = vmul.f32 %v154_v17, %v139_v16  ;;  %v227_v26 = vpop.permute.xlu0 %226 }
  0xcc   :  { %v366_v51 = vmul.f32 %v227_v26, %v138_v63  ;;  %v44_v26 = vld [vmem:[%s5584_s4 + $0x18] sm:$0xff] }
  0xcd   :  { %420 = vperm.xlu1 %3790, %v353_v18  }
  0xce   :  { %v165_v20 = vpop.permute.xlu1 %164 }
  0xcf   :  { %v355_v22 = vmul.f32 %v165_v20, %v139_v16  ;;  %v238_v30 = vpop.permute.xlu0 %237 }
  0xd0   :  { %v368_v56 = vmul.f32 %v238_v30, %v140_v53  ;;  %v736_v30 = vrot.slane %v44_v26, %v3906_v38 }
  0xd1   :  { %423 = vperm.xlu1 %3790, %v354_v21   ;;  %426 = vperm.xlu0 %3789, %v355_v22  }
  0xd2   :  { %v176_v23 = vpop.permute.xlu1 %175 }
  0xd3   :  { %v357_v25 = vmul.f32 %v176_v23, %v139_v16  ;;  %v249_v42 = vpop.permute.xlu0 %248 }
  0xd4   :  { %v370_v60 = vmul.f32 %v249_v42, %v140_v53 }
  0xd5   :  { %429 = vperm.xlu1 %3790, %v356_v24   ;;  %432 = vperm.xlu0 %3789, %v357_v25   ;;  %v700_v24 = vrot.slane %v3911_v39, %v3898_v34  ;;  %v693_v25 = vrot.slane %v3863_v4, %v3898_v34 }
  0xd6   :  { %v187_v27 = vpop.permute.xlu1 %186 }
  0xd7   :  { %v359_v29 = vmul.f32 %v187_v27, %v139_v16  ;;  %v260_v48 = vpop.permute.xlu0 %259  ;;  %v715_v27 = vrot.slane %v44_v26, %v3869_v7 }
  0xd8   :  { %v372_v2 = vmul.f32 %v260_v48, %v140_v53 }
  0xd9   :  { %435 = vperm.xlu1 %3790, %v358_v28   ;;  %438 = vperm.xlu0 %3789, %v359_v29   ;;  %v722_v28 = vrot.slane %v44_v26, %v3898_v34  ;;  %v729_v29 = vrot.slane %v44_v26, %v3902_v36 }
  0xda   :  { %v198_v31 = vpop.permute.xlu1 %197 }
  0xdb   :  { %v361_v33 = vmul.f32 %v198_v31, %v139_v16  ;;  %v271_v58 = vpop.permute.xlu0 %270  ;;  %v743_v31 = vrot.slane %v44_v26, %v3915_v41 }
  0xdc   :  { %v374_v6 = vmul.f32 %v271_v58, %v140_v53 }
  0xdd   :  { %441 = vperm.xlu1 %3790, %v360_v32   ;;  %444 = vperm.xlu0 %3789, %v361_v33   ;;  %v750_v32 = vrot.slane %v44_v26, %v3921_v44  ;;  %v757_v33 = vrot.slane %v44_v26, %v3925_v47 }
  0xde   :  { %v209_v35 = vpop.permute.xlu1 %208 }
  0xdf   :  { %v363_v40 = vmul.f32 %v209_v35, %v139_v16  ;;  %v282_v62 = vpop.permute.xlu0 %281  ;;  %v764_v35 = vrot.slane %v44_v26, %v3929_v49 }
  0xe0   :  { %v376_v11 = vmul.f32 %v282_v62, %v140_v53 }
  0xe1   :  { %447 = vperm.xlu1 %3790, %v362_v37   ;;  %450 = vperm.xlu0 %3789, %v363_v40   ;;  %v45_v37 = vld [vmem:[%s5584_s4 + $0x20] sm:$0xff] }
  0xe2   :  { %v220_v43 = vpop.permute.xlu1 %219  ;;  %v771_v40 = vrot.slane %v45_v37, %v3869_v7  ;;  %v778_v42 = vrot.slane %v45_v37, %v3898_v34  ;;  %v806_v48 = vrot.slane %v45_v37, %v3921_v44 }
  0xe3   :  { %v365_v46 = vmul.f32 %v220_v43, %v139_v16  ;;  %v293_v9 = vpop.permute.xlu0 %292  ;;  %v785_v43 = vrot.slane %v45_v37, %v3902_v36 }
  0xe4   :  { %v378_v15 = vmul.f32 %v293_v9, %v140_v53 }
  0xe5   :  { %453 = vperm.xlu1 %3790, %v364_v45   ;;  %456 = vperm.xlu0 %3789, %v365_v46   ;;  %v792_v45 = vrot.slane %v45_v37, %v3906_v38  ;;  %v799_v46 = vrot.slane %v45_v37, %v3915_v41 }
  0xe6   :  { %v231_v50 = vpop.permute.xlu1 %230 }
  0xe7   :  { %v367_v52 = vmul.f32 %v231_v50, %v139_v16  ;;  %v304_v13 = vpop.permute.xlu0 %303  ;;  %v813_v50 = vrot.slane %v45_v37, %v3925_v47 }
  0xe8   :  { %v380_v18 = vmul.f32 %v304_v13, %v140_v53 }
  0xe9   :  { %459 = vperm.xlu1 %3790, %v366_v51   ;;  %462 = vperm.xlu0 %3789, %v367_v52   ;;  %v820_v51 = vrot.slane %v45_v37, %v3929_v49  ;;  %v46_v52 = vld [vmem:[%s5584_s4 + $0x68] sm:$0xff] }
  0xea   :  { %v242_v55 = vpop.permute.xlu1 %241  ;;  %v862_v58 = vrot.slane %v46_v52, %v3921_v44 }
  0xeb   :  { %v369_v57 = vmul.f32 %v242_v55, %v141_v54  ;;  %v315_v20 = vpop.permute.xlu0 %314  ;;  %v841_v55 = vrot.slane %v46_v52, %v3902_v36 }
  0xec   :  { %v382_v22 = vmul.f32 %v315_v20, %v140_v53  ;;  %v827_v53 = vrot.slane %v46_v52, %v3869_v7 }
  0xed   :  { %465 = vperm.xlu1 %3790, %v368_v56   ;;  %468 = vperm.xlu0 %3789, %v369_v57   ;;  %v848_v56 = vrot.slane %v46_v52, %v3906_v38  ;;  %v855_v57 = vrot.slane %v46_v52, %v3915_v41 }
  0xee   :  { %v253_v59 = vpop.permute.xlu1 %252 }
  0xef   :  { %v371_v61 = vmul.f32 %v253_v59, %v141_v54  ;;  %v869_v59 = vrot.slane %v46_v52, %v3925_v47 }
  0xf1   :  { %471 = vperm.xlu1 %3790, %v370_v60   ;;  %474 = vperm.xlu0 %3789, %v371_v61   ;;  %v876_v60 = vrot.slane %v46_v52, %v3929_v49  ;;  %v47_v61 = vld [vmem:[%s5584_s4 + $0x70] sm:$0xff] }
  0xf2   :  { %v264_v1 = vpop.permute.xlu1 %263  ;;  %v883_v62 = vrot.slane %v47_v61, %v3869_v7  ;;  %v932_v9 = vrot.slane %v47_v61, %v3929_v49 }
  0xf3   :  { %v373_v63 = vmul.f32 %v264_v1, %v141_v54  ;;  %v890_v1 = vrot.slane %v47_v61, %v3898_v34 }
  0xf5   :  { %477 = vperm.xlu1 %3790, %v372_v2   ;;  %480 = vperm.xlu0 %3789, %v373_v63   ;;  %v897_v2 = vrot.slane %v47_v61, %v3902_v36  ;;  %v904_v63 = vrot.slane %v47_v61, %v3906_v38 }
  0xf6   :  { %v275_v5 = vpop.permute.xlu1 %274 }
  0xf7   :  { %v375_v8 = vmul.f32 %v275_v5, %v141_v54  ;;  %v911_v5 = vrot.slane %v47_v61, %v3915_v41 }
  0xf9   :  { %483 = vperm.xlu1 %3790, %v374_v6   ;;  %486 = vperm.xlu0 %3789, %v375_v8   ;;  %v918_v6 = vrot.slane %v47_v61, %v3921_v44  ;;  %v925_v8 = vrot.slane %v47_v61, %v3925_v47 }
  0xfa   :  { %v286_v10 = vpop.permute.xlu1 %285 }
  0xfb   :  { %v377_v12 = vmul.f32 %v286_v10, %v141_v54 }
  0xfd   :  { %489 = vperm.xlu1 %3790, %v376_v11   ;;  %492 = vperm.xlu0 %3789, %v377_v12   ;;  %v1304_v12 = vrot.slane %v3863_v4, %v3902_v36 }
  0xfe   :  { %v297_v14 = vpop.permute.xlu1 %296 }
  0xff   :  { %v379_v16 = vmul.f32 %v297_v14, %v141_v54 }
 0x101   :  { %495 = vperm.xlu1 %3790, %v378_v15   ;;  %498 = vperm.xlu0 %3789, %v379_v16   ;;  %v3996_v15 = vld [vmem:[%s5584_s4 + $0x28] sm:$0xff]  ;;  %v1315_v16 = vrot.slane %v3911_v39, %v3902_v36 }
 0x102   :  { %v308_v17 = vpop.permute.xlu1 %307  ;;  %v4004_v4 = vrot.slane %v3996_v15, %v3898_v34 }
 0x103   :  { %v381_v19 = vmul.f32 %v308_v17, %v141_v54  ;;  %v1342_v17 = vrot.slane %v3996_v15, %v3869_v7 }
 0x105   :  { %501 = vperm.xlu1 %3790, %v380_v18   ;;  %504 = vperm.xlu0 %3789, %v381_v19  }
 0x106   :  { %v319_v21 = vpop.permute.xlu1 %318 }
 0x107   :  { %v383_v23 = vmul.f32 %v319_v21, %v141_v54  ;;  %v834_v54 = vrot.slane %v46_v52, %v3898_v34 }
 0x109   :  { %507 = vperm.xlu1 %3790, %v382_v22   ;;  %510 = vperm.xlu0 %3789, %v383_v23  }
 0x10d   :  { %702 = vbcast.lane.b32.xlu1 %v700_v24, 256  ;;  %695 = vbcast.lane.b32.xlu0 %v693_v25, 256 }
 0x111   :  { %717 = vbcast.lane.b32.xlu1 %v715_v27, 256  ;;  %724 = vbcast.lane.b32.xlu0 %v722_v28, 256  ;;  %v4008_v27 = vand.u32 127, %v28_v0 }
 0x113   :  { %5605 = vst [vmem:[#allocation14_spill] sm:$0xff] %v4008_v27 }
 0x115   :  { %731 = vbcast.lane.b32.xlu1 %v729_v29, 256  ;;  %738 = vbcast.lane.b32.xlu0 %v736_v30, 256  ;;  %v518_v30 = vadd.s32 4294967288, %v4008_v27 }
 0x119   :  { %745 = vbcast.lane.b32.xlu1 %v743_v31, 256  ;;  %752 = vbcast.lane.b32.xlu0 %v750_v32, 256 }
 0x11d   :  { %759 = vbcast.lane.b32.xlu1 %v757_v33, 256  ;;  %766 = vbcast.lane.b32.xlu0 %v764_v35, 256  ;;  %v4017_v33 = vsub.s32 %v4008_v27, %v3858_v3  ;;  %v4020_v35 = vsub.s32 %v518_v30, %v3858_v3 }
 0x11f   :  { %5606 = vst [vmem:[#allocation15_spill] sm:$0xff] %v4017_v33  ;;  %5607 = vst [vmem:[#allocation16_spill] sm:$0xff] %v4020_v35 }
 0x121   :  { %773 = vbcast.lane.b32.xlu1 %v771_v40, 256  ;;  %780 = vbcast.lane.b32.xlu0 %v778_v42, 256 }
 0x125   :  { %787 = vbcast.lane.b32.xlu1 %v785_v43, 256  ;;  %794 = vbcast.lane.b32.xlu0 %v792_v45, 256 }
 0x129   :  { %801 = vbcast.lane.b32.xlu1 %v799_v46, 256  ;;  %808 = vbcast.lane.b32.xlu0 %v806_v48, 256 }
 0x12d   :  { %815 = vbcast.lane.b32.xlu1 %v813_v50, 256  ;;  %822 = vbcast.lane.b32.xlu0 %v820_v51, 256 }
 0x131   :  { %829 = vbcast.lane.b32.xlu1 %v827_v53, 256  ;;  %836 = vbcast.lane.b32.xlu0 %v834_v54, 256  ;;  %v418_v10 = vpop.permute.xlu0 %417 }
 0x132   :  { %v517_v53 = vrot.slane %v418_v10, %v4017_v33 }
 0x135   :  { %843 = vbcast.lane.b32.xlu1 %v841_v55, 256  ;;  %850 = vbcast.lane.b32.xlu0 %v848_v56, 256 }
 0x139   :  { %857 = vbcast.lane.b32.xlu1 %v855_v57, 256  ;;  %864 = vbcast.lane.b32.xlu0 %v862_v58, 256 }
 0x13d   :  { %871 = vbcast.lane.b32.xlu1 %v869_v59, 256  ;;  %878 = vbcast.lane.b32.xlu0 %v876_v60, 256 }
 0x141   :  { %885 = vbcast.lane.b32.xlu1 %v883_v62, 256  ;;  %892 = vbcast.lane.b32.xlu0 %v890_v1, 256 }
 0x145   :  { %899 = vbcast.lane.b32.xlu1 %v897_v2, 256  ;;  %906 = vbcast.lane.b32.xlu0 %v904_v63, 256 }
 0x149   :  { %913 = vbcast.lane.b32.xlu1 %v911_v5, 256  ;;  %920 = vbcast.lane.b32.xlu0 %v918_v6, 256 }
 0x14c   :  { %v421_v11 = vpop.permute.xlu1 %420 }
 0x14d   :  { %927 = vbcast.lane.b32.xlu1 %v925_v8, 256  ;;  %934 = vbcast.lane.b32.xlu0 %v932_v9, 256  ;;  %v522_v46 = vrot.slane %v421_v11, %v4020_v35 }
 0x14f   :  { %v524_v62 = vsel %vm523_vm1, %v522_v46, %v517_v53 }
 0x150   :  { %v427_v13 = vpop.permute.xlu0 %426  ;;  %v424_v14 = vpop.permute.xlu1 %423 }
 0x151   :  { %1306 = vbcast.lane.b32.xlu1 %v1304_v12, 256  ;;  %1310 = vbcast.lane.b32.xlu0 %v1304_v12, 264  ;;  %v532_v37 = vrot.slane %v427_v13, %v4020_v35  ;;  %v528_v0 = vrot.slane %v424_v14, %v4017_v33 }
 0x153   :  { %v533_v54 = vsel %vm523_vm1, %v532_v37, %v528_v0 }
 0x154   :  { %v433_v18 = vpop.permute.xlu0 %432  ;;  %v430_v19 = vpop.permute.xlu1 %429  ;;  %v661_v5 = vsel %vm660_vm2, %v533_v54, %v524_v62 }
 0x155   :  { %1317 = vbcast.lane.b32.xlu1 %v1315_v16, 256  ;;  %1348 = vbcast.lane.b32.xlu0 %v1342_v17, 264  ;;  %v541_v43 = vrot.slane %v433_v18, %v4020_v35  ;;  %v537_v45 = vrot.slane %v430_v19, %v4017_v33 }
 0x157   :  { %v542_v59 = vsel %vm523_vm1, %v541_v43, %v537_v45 }
 0x158   :  { %v439_v20 = vpop.permute.xlu0 %438  ;;  %v436_v21 = vpop.permute.xlu1 %435  ;;  %v663_v8 = vsel %vm662_vm3, %v542_v59, %v661_v5 }
 0x159   :  { %1321 = vbcast.lane.b32.xlu1 %v1315_v16, 264  ;;  %1359 = vbcast.lane.b32.xlu0 %v4004_v4, 264  ;;  %v550_v48 = vrot.slane %v439_v20, %v4020_v35  ;;  %v546_v50 = vrot.slane %v436_v21, %v4017_v33 }
 0x15b   :  { %v551_v1 = vsel %vm523_vm1, %v550_v48, %v546_v50 }
 0x15c   :  { %v445_v22 = vpop.permute.xlu0 %444  ;;  %v442_v23 = vpop.permute.xlu1 %441  ;;  %v665_v12 = vsel %vm664_vm4, %v551_v1, %v663_v8 }
 0x15d   :  { %1344 = vbcast.lane.b32.xlu1 %v1342_v17, 256  ;;  %v559_v51 = vrot.slane %v445_v22, %v4020_v35  ;;  %v555_v52 = vrot.slane %v442_v23, %v4017_v33 }
 0x15f   :  { %v560_v6 = vsel %vm523_vm1, %v559_v51, %v555_v52 }
 0x160   :  { %v451_v39 = vpop.permute.xlu0 %450  ;;  %v448_v24 = vpop.permute.xlu1 %447  ;;  %v667_v14 = vsel %vm666_vm5, %v560_v6, %v665_v12  ;;  %v1375_v12 = vrot.slane %v3996_v15, %v3906_v38 }
 0x161   :  { %v568_v55 = vrot.slane %v451_v39, %v4020_v35  ;;  %v564_v56 = vrot.slane %v448_v24, %v4017_v33 }
 0x163   :  { %v569_v9 = vsel %vm523_vm1, %v568_v55, %v564_v56 }
 0x164   :  { %v457_v25 = vpop.permute.xlu0 %456  ;;  %v454_v26 = vpop.permute.xlu1 %453  ;;  %v669_v17 = vsel %vm668_vm6, %v569_v9, %v667_v14  ;;  %v1386_v14 = vrot.slane %v3996_v15, %v3915_v41 }
 0x165   :  { %v577_v60 = vrot.slane %v457_v25, %v4020_v35  ;;  %v573_v61 = vrot.slane %v454_v26, %v4017_v33 }
 0x167   :  { %v578_v13 = vsel %vm523_vm1, %v577_v60, %v573_v61 }
 0x168   :  { %v463_v28 = vpop.permute.xlu0 %462  ;;  %v460_v29 = vpop.permute.xlu1 %459  ;;  %v671_v20 = vsel %vm670_vm7, %v578_v13, %v669_v17  ;;  %v1397_v17 = vrot.slane %v3996_v15, %v3921_v44 }
 0x169   :  { %v586_v2 = vrot.slane %v463_v28, %v4020_v35  ;;  %v582_v63 = vrot.slane %v460_v29, %v4017_v33 }
 0x16b   :  { %v587_v16 = vsel %vm523_vm1, %v586_v2, %v582_v63 }
 0x16c   :  { %v4011_v31 = vpop.permute.xlu0 %468  ;;  %v4013_v32 = vpop.permute.xlu1 %465  ;;  %v673_v21 = vsel %vm672_vm8, %v587_v16, %v671_v20  ;;  %v1419_v20 = vrot.slane %v3996_v15, %v3929_v49 }
 0x16d   :  { %v684_v28 = vsel %vm683_vm9, %v673_v21, 0.0  ;;  %v595_v29 = vrot.slane %v4011_v31, %v4020_v35  ;;  %v591_v30 = vrot.slane %v4013_v32, %v4017_v33  ;;  %v49_v21 = vld [vmem:[%s5584_s4 + $0x30] sm:$0xff] }
 0x16f   :  { %v596_v32 = vsel %vm523_vm1, %v595_v29, %v591_v30  ;;  %v1463_v29 = vrot.slane %v49_v21, %v3906_v38 }
 0x170   :  { %v475_v40 = vpop.permute.xlu0 %474  ;;  %v472_v42 = vpop.permute.xlu1 %471 }
 0x171   :  { %v604_v22 = vrot.slane %v475_v40, %v4020_v35  ;;  %v600_v23 = vrot.slane %v472_v42, %v4017_v33 }
 0x173   :  { %v605_v43 = vsel %vm523_vm1, %v604_v22, %v600_v23  ;;  %v1430_v23 = vrot.slane %v49_v21, %v3869_v7 }
 0x174   :  { %v481_v57 = vpop.permute.xlu0 %480  ;;  %v478_v58 = vpop.permute.xlu1 %477  ;;  %v674_v54 = vsel %vm660_vm2, %v605_v43, %v596_v32 }
 0x175   :  { %v613_v39 = vrot.slane %v481_v57, %v4020_v35  ;;  %v609_v24 = vrot.slane %v478_v58, %v4017_v33 }
 0x177   :  { %v614_v31 = vsel %vm523_vm1, %v613_v39, %v609_v24  ;;  %v1441_v24 = vrot.slane %v49_v21, %v3898_v34 }
 0x178   :  { %v487_v10 = vpop.permute.xlu0 %486  ;;  %v484_v11 = vpop.permute.xlu1 %483  ;;  %v675_v56 = vsel %vm662_vm3, %v614_v31, %v674_v54  ;;  %v1507_v31 = vrot.slane %v49_v21, %v3929_v49 }
 0x179   :  { %v622_v37 = vrot.slane %v487_v10, %v4020_v35  ;;  %v618_v0 = vrot.slane %v484_v11, %v4017_v33  ;;  %v1364_v11 = vrot.slane %v3996_v15, %v3902_v36 }
 0x17b   :  { %v623_v51 = vsel %vm523_vm1, %v622_v37, %v618_v0  ;;  %v1474_v37 = vrot.slane %v49_v21, %v3915_v41 }
 0x17c   :  { %v493_v18 = vpop.permute.xlu0 %492  ;;  %v490_v19 = vpop.permute.xlu1 %489  ;;  %v676_v58 = vsel %vm664_vm4, %v623_v51, %v675_v56 }
 0x17d   :  { %v631_v40 = vrot.slane %v493_v18, %v4020_v35  ;;  %v627_v42 = vrot.slane %v490_v19, %v4017_v33 }
 0x17f   :  { %v632_v55 = vsel %vm523_vm1, %v631_v40, %v627_v42  ;;  %v1485_v42 = vrot.slane %v49_v21, %v3921_v44 }
 0x180   :  { %v499_v25 = vpop.permute.xlu0 %498  ;;  %v496_v26 = vpop.permute.xlu1 %495  ;;  %v677_v62 = vsel %vm666_vm5, %v632_v55, %v676_v58 }
 0x181   :  { %685 = vadd.xlane.f32.xlu1 %v684_v28  ;;  %v640_v45 = vrot.slane %v499_v25, %v4020_v35  ;;  %v636_v46 = vrot.slane %v496_v26, %v4017_v33  ;;  %v1452_v26 = vrot.slane %v49_v21, %v3902_v36 }
 0x183   :  { %v641_v57 = vsel %vm523_vm1, %v640_v45, %v636_v46  ;;  %v1496_v45 = vrot.slane %v49_v21, %v3925_v47 }
 0x184   :  { %v505_v48 = vpop.permute.xlu0 %504  ;;  %v502_v50 = vpop.permute.xlu1 %501  ;;  %v678_v63 = vsel %vm668_vm6, %v641_v57, %v677_v62 }
 0x185   :  { %v649_v52 = vrot.slane %v505_v48, %v4020_v35  ;;  %v645_v53 = vrot.slane %v502_v50, %v4017_v33  ;;  %v4145_v48 = vld [vmem:[%s5584_s4 + $0x38] sm:$0xff] }
 0x186   :  { %v1518_v51 = vrot.slane %v4145_v48, %v3869_v7  ;;  %v1540_v55 = vrot.slane %v4145_v48, %v3902_v36  ;;  %v1551_v58 = vrot.slane %v4145_v48, %v3906_v38  ;;  %v1573_v62 = vrot.slane %v4145_v48, %v3921_v44 }
 0x187   :  { %v650_v59 = vsel %vm523_vm1, %v649_v52, %v645_v53  ;;  %v1529_v53 = vrot.slane %v4145_v48, %v3898_v34 }
 0x188   :  { %v511_v60 = vpop.permute.xlu0 %510  ;;  %v508_v61 = vpop.permute.xlu1 %507  ;;  %v679_v6 = vsel %vm670_vm7, %v650_v59, %v678_v63 }
 0x189   :  { %v658_v1 = vrot.slane %v511_v60, %v4020_v35  ;;  %v654_v2 = vrot.slane %v508_v61, %v4017_v33  ;;  %v1562_v60 = vrot.slane %v4145_v48, %v3915_v41 }
 0x18b   :  { %v659_v5 = vsel %vm523_vm1, %v658_v1, %v654_v2 }
 0x18c   :  { %v680_v8 = vsel %vm672_vm8, %v659_v5, %v679_v6  ;;  %v4088_v10 = vpop.permute.xlu1 %702  ;;  %v4107_v19 = vpop.permute.xlu0 %695 }
 0x18d   :  { %v687_v9 = vsel %vm683_vm9, %v680_v8, 0.0 }
 0x18e   :  { %688 = vadd.xlane.f32.xlu0 %v687_v9 }
 0x190   :  { %v4095_v13 = vpop.permute.xlu1 %717  ;;  %v4117_v39 = vpop.permute.xlu0 %724 }
 0x192   :  { %1355 = vbcast.lane.b32.xlu1 %v4004_v4, 256  ;;  %v1408_v4 = vrot.slane %v3996_v15, %v3925_v47 }
 0x194   :  { %v4099_v16 = vpop.permute.xlu1 %731  ;;  %v4122_v15 = vpop.permute.xlu0 %738 }
 0x196   :  { %1366 = vbcast.lane.b32.xlu1 %v1364_v11, 256 }
 0x198   :  { %v4105_v18 = vpop.permute.xlu1 %745  ;;  %v4128_v30 = vpop.permute.xlu0 %752 }
 0x19a   :  { %1377 = vbcast.lane.b32.xlu1 %v1375_v12, 256 }
 0x19c   :  { %v4114_v22 = vpop.permute.xlu1 %759  ;;  %v4133_v40 = vpop.permute.xlu0 %766 }
 0x19e   :  { %1388 = vbcast.lane.b32.xlu1 %v1386_v14, 256 }
 0x1a0   :  { %v4120_v25 = vpop.permute.xlu1 %773  ;;  %v4139_v46 = vpop.permute.xlu0 %780 }
 0x1a2   :  { %1399 = vbcast.lane.b32.xlu1 %v1397_v17, 256 }
 0x1a4   :  { %1370 = vbcast.lane.b32.xlu0 %v1364_v11, 264  ;;  %v4125_v28 = vpop.permute.xlu1 %787  ;;  %v4149_v32 = vpop.permute.xlu0 %794 }
 0x1a6   :  { %1410 = vbcast.lane.b32.xlu1 %v1408_v4, 256 }
 0x1a8   :  { %1381 = vbcast.lane.b32.xlu0 %v1375_v12, 264  ;;  %v4131_v0 = vpop.permute.xlu1 %801  ;;  %v4157_v54 = vpop.permute.xlu0 %808 }
 0x1aa   :  { %1421 = vbcast.lane.b32.xlu1 %v1419_v20, 256 }
 0x1ac   :  { %1392 = vbcast.lane.b32.xlu0 %v1386_v14, 264  ;;  %v4136_v43 = vpop.permute.xlu1 %815  ;;  %v4163_v57 = vpop.permute.xlu0 %822 }
 0x1ae   :  { %1432 = vbcast.lane.b32.xlu1 %v1430_v23, 256 }
 0x1b0   :  { %1403 = vbcast.lane.b32.xlu0 %v1397_v17, 264  ;;  %v4147_v50 = vpop.permute.xlu1 %829  ;;  %v4171_v61 = vpop.permute.xlu0 %836 }
 0x1b2   :  { %1443 = vbcast.lane.b32.xlu1 %v1441_v24, 256 }
 0x1b4   :  { %1414 = vbcast.lane.b32.xlu0 %v1408_v4, 264  ;;  %v4153_v52 = vpop.permute.xlu1 %843  ;;  %v4177_v2 = vpop.permute.xlu0 %850 }
 0x1b6   :  { %1454 = vbcast.lane.b32.xlu1 %v1452_v26, 256 }
 0x1b8   :  { %1425 = vbcast.lane.b32.xlu0 %v1419_v20, 264  ;;  %v4161_v56 = vpop.permute.xlu1 %857  ;;  %v4181_v5 = vpop.permute.xlu0 %864 }
 0x1ba   :  { %1465 = vbcast.lane.b32.xlu1 %v1463_v29, 256 }
 0x1bc   :  { %1436 = vbcast.lane.b32.xlu0 %v1430_v23, 264  ;;  %v4167_v59 = vpop.permute.xlu1 %871  ;;  %v4185_v8 = vpop.permute.xlu0 %878 }
 0x1be   :  { %1476 = vbcast.lane.b32.xlu1 %v1474_v37, 256 }
 0x1c0   :  { %1447 = vbcast.lane.b32.xlu0 %v1441_v24, 264  ;;  %v4175_v1 = vpop.permute.xlu1 %885  ;;  %v4189_v11 = vpop.permute.xlu0 %892 }
 0x1c2   :  { %1487 = vbcast.lane.b32.xlu1 %v1485_v42, 256 }
 0x1c4   :  { %1458 = vbcast.lane.b32.xlu0 %v1452_v26, 264  ;;  %v4179_v63 = vpop.permute.xlu1 %899  ;;  %v4193_v14 = vpop.permute.xlu0 %906 }
 0x1c6   :  { %1498 = vbcast.lane.b32.xlu1 %v1496_v45, 256 }
 0x1c8   :  { %1469 = vbcast.lane.b32.xlu0 %v1463_v29, 264  ;;  %v4183_v6 = vpop.permute.xlu1 %913  ;;  %v4197_v4 = vpop.permute.xlu0 %920 }
 0x1ca   :  { %1509 = vbcast.lane.b32.xlu1 %v1507_v31, 256 }
 0x1cc   :  { %1480 = vbcast.lane.b32.xlu0 %v1474_v37, 264  ;;  %v4187_v9 = vpop.permute.xlu1 %927  ;;  %v4201_v21 = vpop.permute.xlu0 %934 }
 0x1ce   :  { %1520 = vbcast.lane.b32.xlu1 %v1518_v51, 256 }
 0x1d0   :  { %1491 = vbcast.lane.b32.xlu0 %v1485_v42, 264  ;;  %v4191_v12 = vpop.permute.xlu1 %1306  ;;  %v4205_v24 = vpop.permute.xlu0 %1310 }
 0x1d2   :  { %1531 = vbcast.lane.b32.xlu1 %v1529_v53, 256 }
 0x1d4   :  { %1502 = vbcast.lane.b32.xlu0 %v1496_v45, 264  ;;  %v4195_v17 = vpop.permute.xlu1 %1317  ;;  %v4210_v37 = vpop.permute.xlu0 %1348 }
 0x1d5   :  { %5608 = vst [vmem:[#allocation17_spill] sm:$0xff] %v4195_v17 }
 0x1d6   :  { %1542 = vbcast.lane.b32.xlu1 %v1540_v55, 256 }
 0x1d8   :  { %1513 = vbcast.lane.b32.xlu0 %v1507_v31, 264  ;;  %v4199_v20 = vpop.permute.xlu1 %1321 }
 0x1d9   :  { %5609 = vst [vmem:[#allocation18_spill] sm:$0xff] %v4199_v20 }
 0x1da   :  { %1553 = vbcast.lane.b32.xlu1 %v1551_v58, 256 }
 0x1dc   :  { %1524 = vbcast.lane.b32.xlu0 %v1518_v51, 264  ;;  %v4203_v23 = vpop.permute.xlu1 %1344 }
 0x1de   :  { %1564 = vbcast.lane.b32.xlu1 %v1562_v60, 256 }
 0x1e0   :  { %1535 = vbcast.lane.b32.xlu0 %v1529_v53, 264 }
 0x1e2   :  { %1575 = vbcast.lane.b32.xlu1 %v1573_v62, 256 }
 0x1e4   :  { %1546 = vbcast.lane.b32.xlu0 %v1540_v55, 264 }
 0x1e8   :  { %1557 = vbcast.lane.b32.xlu0 %v1551_v58, 264 }
 0x1ec   :  { %1568 = vbcast.lane.b32.xlu0 %v1562_v60, 264 }
 0x1f0   :  { %1579 = vbcast.lane.b32.xlu0 %v1573_v62, 264 }
 0x20e   :  { %v686_v26 = vpop.xlane.xlu1 %685 }
 0x20f   :  { %v4208_v29 = vadd.f32 %v4107_v19, %v686_v26  ;;  %v4222_v19 = vpop.permute.xlu0 %1359 }
 0x211   :  { %5610 = vst [vmem:[#allocation19_spill] sm:$0xff] %v4208_v29  ;;  %v969_v42 = vmul.f32 %v4117_v39, %v4208_v29  ;;  %v968_v45 = vmul.f32 %v4095_v13, %v4208_v29  ;;  %v971_v31 = vmul.f32 %v4122_v15, %v4208_v29  ;;  %v970_v51 = vmul.f32 %v4099_v16, %v4208_v29 }
 0x212   :  { %v4220_v53 = vpop.permute.xlu1 %1355  ;;  %v973_v39 = vmul.f32 %v4128_v30, %v4208_v29  ;;  %v972_v13 = vmul.f32 %v4105_v18, %v4208_v29  ;;  %v975_v16 = vmul.f32 %v4133_v40, %v4208_v29  ;;  %v974_v15 = vmul.f32 %v4114_v22, %v4208_v29 }
 0x213   :  { %1036 = vperm.xlu0 %3789, %v969_v42   ;;  %1033 = vperm.xlu1 %3790, %v968_v45   ;;  %v977_v30 = vmul.f32 %v4139_v46, %v4208_v29  ;;  %v976_v18 = vmul.f32 %v4120_v25, %v4208_v29  ;;  %v979_v40 = vmul.f32 %v4149_v32, %v4208_v29 }
 0x214   :  { %v978_v22 = vmul.f32 %v4125_v28, %v4208_v29  ;;  %v981_v25 = vmul.f32 %v4157_v54, %v4208_v29  ;;  %v980_v45 = vmul.f32 %v4131_v0, %v4208_v29  ;;  %v983_v28 = vmul.f32 %v4163_v57, %v4208_v29 }
 0x215   :  { %v982_v32 = vmul.f32 %v4136_v43, %v4208_v29 }
 0x216   :  { %v4228_v58 = vpop.permute.xlu1 %1366 }
 0x217   :  { %1042 = vperm.xlu0 %3789, %v971_v31   ;;  %1039 = vperm.xlu1 %3790, %v970_v51  }
 0x21a   :  { %v4240_v62 = vpop.permute.xlu1 %1377 }
 0x21b   :  { %v689_v55 = vpop.xlane.xlu0 %688  ;;  %1048 = vperm.xlu0 %3789, %v973_v39   ;;  %1045 = vperm.xlu1 %3790, %v972_v13  }
 0x21c   :  { %v4257_v31 = vadd.f32 %v4088_v10, %v689_v55 }
 0x21e   :  { %v4248_v42 = vpop.permute.xlu1 %1388  ;;  %5611 = vst [vmem:[#allocation20_spill] sm:$0xff] %v4257_v31  ;;  %v985_v0 = vmul.f32 %v4171_v61, %v4257_v31  ;;  %v984_v54 = vmul.f32 %v4147_v50, %v4257_v31  ;;  %v987_v43 = vmul.f32 %v4177_v2, %v4257_v31  ;;  %v986_v13 = vmul.f32 %v4153_v52, %v4257_v31 }
 0x21f   :  { %1054 = vperm.xlu0 %3789, %v975_v16   ;;  %1051 = vperm.xlu1 %3790, %v974_v15   ;;  %v4234_v60 = vpop.permute.xlu0 %1370  ;;  %v989_v61 = vmul.f32 %v4181_v5, %v4257_v31  ;;  %v988_v50 = vmul.f32 %v4161_v56, %v4257_v31  ;;  %v991_v2 = vmul.f32 %v4185_v8, %v4257_v31 }
 0x220   :  { %v990_v52 = vmul.f32 %v4167_v59, %v4257_v31  ;;  %v993_v56 = vmul.f32 %v4189_v11, %v4257_v31  ;;  %v995_v8 = vmul.f32 %v4193_v14, %v4257_v31  ;;  %v994_v59 = vmul.f32 %v4179_v63, %v4257_v31 }
 0x221   :  { %v997_v11 = vmul.f32 %v4197_v4, %v4257_v31  ;;  %v1584_v14 = vrot.slane %v4145_v48, %v3925_v47  ;;  %v999_v4 = vmul.f32 %v4201_v21, %v4257_v31 }
 0x222   :  { %v4263_v51 = vpop.permute.xlu1 %1399 }
 0x223   :  { %1060 = vperm.xlu0 %3789, %v977_v30   ;;  %1057 = vperm.xlu1 %3790, %v976_v18   ;;  %v4242_v26 = vpop.permute.xlu0 %1381  ;;  %v992_v30 = vmul.f32 %v4175_v1, %v4257_v31  ;;  %v996_v1 = vmul.f32 %v4183_v6, %v4257_v31 }
 0x226   :  { %v4271_v10 = vpop.permute.xlu1 %1410 }
 0x227   :  { %1066 = vperm.xlu0 %3789, %v979_v40   ;;  %1063 = vperm.xlu1 %3790, %v978_v22   ;;  %v4250_v46 = vpop.permute.xlu0 %1392 }
 0x22a   :  { %v4283_v55 = vpop.permute.xlu1 %1421 }
 0x22b   :  { %1072 = vperm.xlu0 %3789, %v981_v25   ;;  %1069 = vperm.xlu1 %3790, %v980_v45   ;;  %v4265_v39 = vpop.permute.xlu0 %1403  ;;  %5612 = vst [vmem:[#allocation21_spill] sm:$0xff] %v4283_v55  ;;  %v998_v25 = vmul.f32 %v4187_v9, %v4257_v31 }
 0x22e   :  { %v4291_v15 = vpop.permute.xlu1 %1432 }
 0x22f   :  { %1078 = vperm.xlu0 %3789, %v983_v28   ;;  %1075 = vperm.xlu1 %3790, %v982_v32   ;;  %v4273_v57 = vpop.permute.xlu0 %1414  ;;  %5613 = vst [vmem:[#allocation22_spill] sm:$0xff] %v4291_v15  ;;  %v1595_v28 = vrot.slane %v4145_v48, %v3929_v49  ;;  %v51_v32 = vld [vmem:[%s5584_s4 + $0x40] sm:$0xff] }
 0x230   :  { %v1606_v9 = vrot.slane %v51_v32, %v3869_v7  ;;  %v1628_v48 = vrot.slane %v51_v32, %v3902_v36 }
 0x232   :  { %v4303_v18 = vpop.permute.xlu1 %1443 }
 0x233   :  { %1084 = vperm.xlu0 %3789, %v985_v0   ;;  %1081 = vperm.xlu1 %3790, %v984_v54   ;;  %v4285_v16 = vpop.permute.xlu0 %1425  ;;  %5614 = vst [vmem:[#allocation23_spill] sm:$0xff] %v4303_v18  ;;  %v1617_v54 = vrot.slane %v51_v32, %v3898_v34 }
 0x236   :  { %v4313_v22 = vpop.permute.xlu1 %1454 }
 0x237   :  { %1090 = vperm.xlu0 %3789, %v987_v43   ;;  %1087 = vperm.xlu1 %3790, %v986_v13   ;;  %v4293_v5 = vpop.permute.xlu0 %1436  ;;  %5616 = vst [vmem:[#allocation25_spill] sm:$0xff] %v4313_v22 }
 0x23a   :  { %v4321_v45 = vpop.permute.xlu1 %1465 }
 0x23b   :  { %1096 = vperm.xlu0 %3789, %v989_v61   ;;  %1093 = vperm.xlu1 %3790, %v988_v50   ;;  %v4305_v40 = vpop.permute.xlu0 %1447  ;;  %5618 = vst [vmem:[#allocation27_spill] sm:$0xff] %v4321_v45  ;;  %v1639_v61 = vrot.slane %v51_v32, %v3906_v38 }
 0x23c   :  { %5615 = vst [vmem:[#allocation24_spill] sm:$0xff] %v4305_v40 }
 0x23e   :  { %v4331_v0 = vpop.permute.xlu1 %1476 }
 0x23f   :  { %1102 = vperm.xlu0 %3789, %v991_v2   ;;  %1099 = vperm.xlu1 %3790, %v990_v52   ;;  %v4315_v63 = vpop.permute.xlu0 %1458  ;;  %5620 = vst [vmem:[#allocation29_spill] sm:$0xff] %v4331_v0  ;;  %v1650_v52 = vrot.slane %v51_v32, %v3915_v41 }
 0x240   :  { %5617 = vst [vmem:[#allocation26_spill] sm:$0xff] %v4315_v63 }
 0x242   :  { %v4336_v43 = vpop.permute.xlu1 %1487 }
 0x243   :  { %1108 = vperm.xlu0 %3789, %v993_v56   ;;  %1105 = vperm.xlu1 %3790, %v992_v30   ;;  %v4323_v6 = vpop.permute.xlu0 %1469  ;;  %5622 = vst [vmem:[#allocation31_spill] sm:$0xff] %v4336_v43 }
 0x244   :  { %5619 = vst [vmem:[#allocation28_spill] sm:$0xff] %v4323_v6 }
 0x246   :  { %v4342_v50 = vpop.permute.xlu1 %1498 }
 0x247   :  { %1114 = vperm.xlu0 %3789, %v995_v8   ;;  %1111 = vperm.xlu1 %3790, %v994_v59   ;;  %v4333_v21 = vpop.permute.xlu0 %1480  ;;  %5624 = vst [vmem:[#allocation33_spill] sm:$0xff] %v4342_v50  ;;  %v1661_v8 = vrot.slane %v51_v32, %v3921_v44  ;;  %v1672_v59 = vrot.slane %v51_v32, %v3925_v47 }
 0x248   :  { %5621 = vst [vmem:[#allocation30_spill] sm:$0xff] %v4333_v21 }
 0x24a   :  { %v4347_v56 = vpop.permute.xlu1 %1509 }
 0x24b   :  { %1120 = vperm.xlu0 %3789, %v997_v11   ;;  %1117 = vperm.xlu1 %3790, %v996_v1   ;;  %v4338_v13 = vpop.permute.xlu0 %1491  ;;  %5626 = vst [vmem:[#allocation35_spill] sm:$0xff] %v4347_v56 }
 0x24c   :  { %5623 = vst [vmem:[#allocation32_spill] sm:$0xff] %v4338_v13 }
 0x24e   :  { %v4353_v11 = vpop.permute.xlu1 %1520 }
 0x24f   :  { %1590 = vbcast.lane.b32.xlu0 %v1584_v14, 264  ;;  %1123 = vperm.xlu1 %3790, %v998_v25   ;;  %v4344_v2 = vpop.permute.xlu0 %1502  ;;  %5628 = vst [vmem:[#allocation37_spill] sm:$0xff] %v4353_v11  ;;  %v52_v25 = vld [vmem:[%s5584_s4 + $0x78] sm:$0xff] }
 0x250   :  { %5625 = vst [vmem:[#allocation34_spill] sm:$0xff] %v4344_v2  ;;  %v1771_v35 = vrot.slane %v52_v25, %v3929_v49 }
 0x253   :  { %1126 = vperm.xlu0 %3789, %v999_v4   ;;  %1586 = vbcast.lane.b32.xlu1 %v1584_v14, 256  ;;  %v4349_v30 = vpop.permute.xlu0 %1513  ;;  %v1683_v14 = vrot.slane %v51_v32, %v3929_v49  ;;  %v4361_v4 = vpop.permute.xlu1 %1531  ;;  %v1716_v32 = vrot.slane %v52_v25, %v3902_v36 }
 0x254   :  { %5627 = vst [vmem:[#allocation36_spill] sm:$0xff] %v4349_v30  ;;  %5630 = vst [vmem:[#allocation39_spill] sm:$0xff] %v4361_v4 }
 0x257   :  { %1601 = vbcast.lane.b32.xlu0 %v1595_v28, 264  ;;  %1597 = vbcast.lane.b32.xlu1 %v1595_v28, 256  ;;  %v4355_v1 = vpop.permute.xlu0 %1524 }
 0x258   :  { %5629 = vst [vmem:[#allocation38_spill] sm:$0xff] %v4355_v1 }
 0x25b   :  { %1612 = vbcast.lane.b32.xlu0 %v1606_v9, 264  ;;  %1608 = vbcast.lane.b32.xlu1 %v1606_v9, 256  ;;  %v4363_v28 = vpop.permute.xlu0 %1535  ;;  %v1694_v9 = vrot.slane %v52_v25, %v3869_v7 }
 0x25c   :  { %5631 = vst [vmem:[#allocation40_spill] sm:$0xff] %v4363_v28 }
 0x25f   :  { %1623 = vbcast.lane.b32.xlu0 %v1617_v54, 264  ;;  %1619 = vbcast.lane.b32.xlu1 %v1617_v54, 256  ;;  %v1705_v54 = vrot.slane %v52_v25, %v3898_v34 }
 0x263   :  { %1634 = vbcast.lane.b32.xlu0 %v1628_v48, 264  ;;  %1630 = vbcast.lane.b32.xlu1 %v1628_v48, 256  ;;  %v4367_v48 = vpop.permute.xlu1 %1542 }
 0x264   :  { %5632 = vst [vmem:[#allocation41_spill] sm:$0xff] %v4367_v48 }
 0x267   :  { %1645 = vbcast.lane.b32.xlu0 %v1639_v61, 264  ;;  %1641 = vbcast.lane.b32.xlu1 %v1639_v61, 256  ;;  %v4369_v61 = vpop.permute.xlu0 %1546 }
 0x268   :  { %5633 = vst [vmem:[#allocation42_spill] sm:$0xff] %v4369_v61 }
 0x26b   :  { %1656 = vbcast.lane.b32.xlu0 %v1650_v52, 264  ;;  %1652 = vbcast.lane.b32.xlu1 %v1650_v52, 256  ;;  %v4372_v52 = vpop.permute.xlu1 %1553 }
 0x26c   :  { %5634 = vst [vmem:[#allocation43_spill] sm:$0xff] %v4372_v52 }
 0x26f   :  { %1667 = vbcast.lane.b32.xlu0 %v1661_v8, 264  ;;  %1663 = vbcast.lane.b32.xlu1 %v1661_v8, 256  ;;  %v4374_v8 = vpop.permute.xlu0 %1557 }
 0x270   :  { %5635 = vst [vmem:[#allocation44_spill] sm:$0xff] %v4374_v8 }
 0x273   :  { %1678 = vbcast.lane.b32.xlu0 %v1672_v59, 264  ;;  %1674 = vbcast.lane.b32.xlu1 %v1672_v59, 256  ;;  %v1727_v59 = vrot.slane %v52_v25, %v3906_v38  ;;  %v4380_v3 = vpop.permute.xlu0 %1568 }
 0x274   :  { %5637 = vst [vmem:[#allocation46_spill] sm:$0xff] %v4380_v3 }
 0x277   :  { %1689 = vbcast.lane.b32.xlu0 %v1683_v14, 264  ;;  %1685 = vbcast.lane.b32.xlu1 %v1683_v14, 256  ;;  %v1738_v14 = vrot.slane %v52_v25, %v3915_v41  ;;  %v4385_v29 = vpop.permute.xlu0 %1579 }
 0x278   :  { %5639 = vst [vmem:[#allocation48_spill] sm:$0xff] %v4385_v29 }
 0x27b   :  { %1700 = vbcast.lane.b32.xlu0 %v1694_v9, 264  ;;  %1696 = vbcast.lane.b32.xlu1 %v1694_v9, 256  ;;  %v4378_v9 = vpop.permute.xlu1 %1564 }
 0x27c   :  { %5636 = vst [vmem:[#allocation45_spill] sm:$0xff] %v4378_v9 }
 0x27f   :  { %1711 = vbcast.lane.b32.xlu0 %v1705_v54, 264  ;;  %1707 = vbcast.lane.b32.xlu1 %v1705_v54, 256  ;;  %v1749_v54 = vrot.slane %v52_v25, %v3921_v44  ;;  %v4383_v27 = vpop.permute.xlu1 %1575 }
 0x280   :  { %5638 = vst [vmem:[#allocation47_spill] sm:$0xff] %v4383_v27 }
 0x283   :  { %1722 = vbcast.lane.b32.xlu0 %v1716_v32, 264  ;;  %1718 = vbcast.lane.b32.xlu1 %v1716_v32, 256  ;;  %v1760_v32 = vrot.slane %v52_v25, %v3925_v47 }
 0x287   :  { %1733 = vbcast.lane.b32.xlu0 %v1727_v59, 264  ;;  %1729 = vbcast.lane.b32.xlu1 %v1727_v59, 256 }
 0x28b   :  { %1744 = vbcast.lane.b32.xlu0 %v1738_v14, 264  ;;  %1740 = vbcast.lane.b32.xlu1 %v1738_v14, 256  ;;  %v53_v14 = vld [vmem:[%s5584_s4 + $0x80] sm:$0xff] }
 0x28c   :  { %v1804_v17 = vrot.slane %v53_v14, %v3902_v36  ;;  %v1815_v48 = vrot.slane %v53_v14, %v3906_v38 }
 0x28f   :  { %1755 = vbcast.lane.b32.xlu0 %v1749_v54, 264  ;;  %1751 = vbcast.lane.b32.xlu1 %v1749_v54, 256  ;;  %v1782_v54 = vrot.slane %v53_v14, %v3869_v7 }
 0x292   :  { %v4388_v31 = vpop.permute.xlu0 %1036  ;;  %v1034_v59 = vpop.permute.xlu1 %1033 }
 0x293   :  { %1766 = vbcast.lane.b32.xlu0 %v1760_v32, 264  ;;  %1762 = vbcast.lane.b32.xlu1 %v1760_v32, 256  ;;  %v1793_v32 = vrot.slane %v53_v14, %v3898_v34  ;;  %v1131_v45 = vrot.slane %v1034_v59, %v4017_v33 }
 0x296   :  { %v4394_v20 = vpop.permute.xlu0 %1042  ;;  %v1040_v27 = vpop.permute.xlu1 %1039 }
 0x297   :  { %1777 = vbcast.lane.b32.xlu0 %v1771_v35, 264  ;;  %1773 = vbcast.lane.b32.xlu1 %v1771_v35, 256  ;;  %v1143_v15 = vrot.slane %v4394_v20, %v4017_v33 }
 0x29a   :  { %v4397_v29 = vpop.permute.xlu0 %1048  ;;  %v4399_v9 = vpop.permute.xlu1 %1045 }
 0x29b   :  { %1788 = vbcast.lane.b32.xlu0 %v1782_v54, 264  ;;  %1784 = vbcast.lane.b32.xlu1 %v1782_v54, 256  ;;  %v1826_v54 = vrot.slane %v53_v14, %v3915_v41 }
 0x29e   :  { %v4402_v25 = vpop.permute.xlu0 %1054  ;;  %v4404_v52 = vpop.permute.xlu1 %1051 }
 0x29f   :  { %1799 = vbcast.lane.b32.xlu0 %v1793_v32, 264  ;;  %1795 = vbcast.lane.b32.xlu1 %v1793_v32, 256  ;;  %v1837_v32 = vrot.slane %v53_v14, %v3921_v44 }
 0x2a2   :  { %v1061_v3 = vpop.permute.xlu0 %1060  ;;  %v1058_v35 = vpop.permute.xlu1 %1057 }
 0x2a3   :  { %1810 = vbcast.lane.b32.xlu0 %v1804_v17, 264  ;;  %1806 = vbcast.lane.b32.xlu1 %v1804_v17, 256  ;;  %v1848_v17 = vrot.slane %v53_v14, %v3925_v47  ;;  %v1163_v21 = vrot.slane %v1058_v35, %v4017_v33 }
 0x2a6   :  { %v1067_v8 = vpop.permute.xlu0 %1066  ;;  %v1064_v4 = vpop.permute.xlu1 %1063 }
 0x2a7   :  { %1821 = vbcast.lane.b32.xlu0 %v1815_v48, 264  ;;  %1817 = vbcast.lane.b32.xlu1 %v1815_v48, 256  ;;  %v4418_v48 = vrot.slane %v53_v14, %v3929_v49  ;;  %v1167_v14 = vrot.slane %v1061_v3, %v4017_v33  ;;  %v1171_v18 = vrot.slane %v1064_v4, %v4017_v33 }
 0x2a8   :  { %v1175_v3 = vrot.slane %v1067_v8, %v4017_v33 }
 0x2aa   :  { %v4409_v61 = vpop.permute.xlu0 %1072  ;;  %v1070_v11 = vpop.permute.xlu1 %1069 }
 0x2ab   :  { %1832 = vbcast.lane.b32.xlu0 %v1826_v54, 264  ;;  %1828 = vbcast.lane.b32.xlu1 %v1826_v54, 256 }
 0x2ae   :  { %v4412_v28 = vpop.permute.xlu0 %1078  ;;  %v4414_v56 = vpop.permute.xlu1 %1075 }
 0x2af   :  { %1843 = vbcast.lane.b32.xlu0 %v1837_v32, 264  ;;  %1839 = vbcast.lane.b32.xlu1 %v1837_v32, 256  ;;  %v1135_v32 = vrot.slane %v4388_v31, %v4017_v33  ;;  %v1147_v31 = vrot.slane %v4399_v9, %v4017_v33  ;;  %v1151_v9 = vrot.slane %v4397_v29, %v4017_v33 }
 0x2b1   :  { %v1256_v63 = vsel %vm660_vm2, %v1135_v32, %v1131_v45  ;;  %v1179_v32 = vrot.slane %v1070_v11, %v4017_v33 }
 0x2b2   :  { %v1085_v1 = vpop.permute.xlu0 %1084  ;;  %v1082_v50 = vpop.permute.xlu1 %1081 }
 0x2b3   :  { %1854 = vbcast.lane.b32.xlu0 %v1848_v17, 264  ;;  %1850 = vbcast.lane.b32.xlu1 %v1848_v17, 256  ;;  %v1139_v17 = vrot.slane %v1040_v27, %v4017_v33  ;;  %v1263_v27 = vsel %vm660_vm2, %v1167_v14, %v1163_v21  ;;  %v1199_v59 = vrot.slane %v1085_v1, %v4017_v33 }
 0x2b4   :  { %v1195_v35 = vrot.slane %v1082_v50, %v4017_v33  ;;  %v1264_v45 = vsel %vm662_vm3, %v1171_v18, %v1263_v27  ;;  %v1183_v1 = vrot.slane %v4409_v61, %v4017_v33  ;;  %v1155_v61 = vrot.slane %v4404_v52, %v4017_v33 }
 0x2b5   :  { %v1257_v40 = vsel %vm662_vm3, %v1139_v17, %v1256_v63  ;;  %v1265_v50 = vsel %vm664_vm4, %v1175_v3, %v1264_v45  ;;  %v1191_v3 = vrot.slane %v4412_v28, %v4017_v33 }
 0x2b6   :  { %v1091_v30 = vpop.permute.xlu0 %1090  ;;  %v1088_v43 = vpop.permute.xlu1 %1087  ;;  %v1258_v63 = vsel %vm664_vm4, %v1143_v15, %v1257_v40  ;;  %v1270_v8 = vsel %vm660_vm2, %v1199_v59, %v1195_v35  ;;  %v1187_v15 = vrot.slane %v4414_v56, %v4017_v33 }
 0x2b7   :  { %1865 = vbcast.lane.b32.xlu0 %v4418_v48, 264  ;;  %v1203_v20 = vrot.slane %v1088_v43, %v4017_v33  ;;  %v1259_v21 = vsel %vm666_vm5, %v1147_v31, %v1258_v63  ;;  %v1207_v18 = vrot.slane %v1091_v30, %v4017_v33  ;;  %v1266_v43 = vsel %vm666_vm5, %v1179_v32, %v1265_v50 }
 0x2b8   :  { %v1260_v27 = vsel %vm668_vm6, %v1151_v9, %v1259_v21  ;;  %v1267_v52 = vsel %vm668_vm6, %v1183_v1, %v1266_v43 }
 0x2b9   :  { %v1271_v29 = vsel %vm662_vm3, %v1203_v20, %v1270_v8  ;;  %v1268_v28 = vsel %vm670_vm7, %v1187_v15, %v1267_v52  ;;  %v1261_v32 = vsel %vm670_vm7, %v1155_v61, %v1260_v27 }
 0x2ba   :  { %v4421_v54 = vpop.permute.xlu0 %1096  ;;  %v1094_v2 = vpop.permute.xlu1 %1093  ;;  %v1272_v59 = vsel %vm664_vm4, %v1207_v18, %v1271_v29  ;;  %v1269_v21 = vsel %vm672_vm8, %v1191_v3, %v1268_v28 }
 0x2bb   :  { %v1211_v40 = vrot.slane %v1094_v2, %v4017_v33  ;;  %v1215_v56 = vrot.slane %v4421_v54, %v4017_v33  ;;  %v1292_v43 = vsel %vm1288_vm10, %v1269_v21, 0.0 }
 0x2be   :  { %v4423_v0 = vpop.permute.xlu0 %1102  ;;  %v4425_v13 = vpop.permute.xlu1 %1099 }
 0x2c2   :  { %v1109_v22 = vpop.permute.xlu0 %1108  ;;  %v1106_v6 = vpop.permute.xlu1 %1105 }
 0x2c3   :  { %v1231_v14 = vrot.slane %v1109_v22, %v4017_v33  ;;  %v1227_v31 = vrot.slane %v1106_v6, %v4017_v33  ;;  %v1159_v22 = vrot.slane %v4402_v25, %v4017_v33  ;;  %v1273_v6 = vsel %vm666_vm5, %v1211_v40, %v1272_v59 }
 0x2c4   :  { %v1223_v25 = vrot.slane %v4423_v0, %v4017_v33 }
 0x2c5   :  { %v1277_v45 = vsel %vm660_vm2, %v1231_v14, %v1227_v31  ;;  %v1262_v50 = vsel %vm672_vm8, %v1159_v22, %v1261_v32 }
 0x2c6   :  { %v1115_v55 = vpop.permute.xlu0 %1114  ;;  %v1112_v4 = vpop.permute.xlu1 %1111  ;;  %v1289_v40 = vsel %vm1288_vm10, %v1262_v50, 0.0 }
 0x2c7   :  { %v1235_v30 = vrot.slane %v1112_v4, %v4017_v33  ;;  %v1219_v4 = vrot.slane %v4425_v13, %v4017_v33  ;;  %v1239_v54 = vrot.slane %v1115_v55, %v4017_v33  ;;  %v1274_v13 = vsel %vm668_vm6, %v1215_v56, %v1273_v6  ;;  %v54_v6 = vld [vmem:[%s5584_s4 + $0x88] sm:$0xff] }
 0x2c8   :  { %v1870_v28 = vrot.slane %v54_v6, %v3869_v7  ;;  %v1914_v21 = vrot.slane %v54_v6, %v3915_v41  ;;  %v1925_v50 = vrot.slane %v54_v6, %v3921_v44 }
 0x2c9   :  { %v1278_v20 = vsel %vm662_vm3, %v1235_v30, %v1277_v45  ;;  %v1275_v55 = vsel %vm670_vm7, %v1219_v4, %v1274_v13 }
 0x2ca   :  { %v1121_v17 = vpop.permute.xlu0 %1120  ;;  %v1118_v11 = vpop.permute.xlu1 %1117  ;;  %v1279_v18 = vsel %vm664_vm4, %v1239_v54, %v1278_v20  ;;  %v1276_v61 = vsel %vm672_vm8, %v1223_v25, %v1275_v55  ;;  %v1881_v54 = vrot.slane %v54_v6, %v3898_v34  ;;  %v1892_v20 = vrot.slane %v54_v6, %v3902_v36 }
 0x2cb   :  { %v1243_v63 = vrot.slane %v1118_v11, %v4017_v33  ;;  %v1247_v8 = vrot.slane %v1121_v17, %v4017_v33  ;;  %v1295_v31 = vsel %vm1288_vm10, %v1276_v61, 0.0 }
 0x2cd   :  { %v1280_v11 = vsel %vm666_vm5, %v1243_v63, %v1279_v18  ;;  %v1936_v18 = vrot.slane %v54_v6, %v3925_v47 }
 0x2ce   :  { %v4472_v2 = vpop.permute.xlu0 %1590  ;;  %v1124_v35 = vpop.permute.xlu1 %1123  ;;  %v1281_v17 = vsel %vm668_vm6, %v1247_v8, %v1280_v11 }
 0x2cf   :  { %5640 = vst [vmem:[#allocation49_spill] sm:$0xff] %v4472_v2  ;;  %v1251_v0 = vrot.slane %v1124_v35, %v4017_v33 }
 0x2d1   :  { %v1282_v30 = vsel %vm670_vm7, %v1251_v0, %v1281_v17  ;;  %v1947_v0 = vrot.slane %v54_v6, %v3929_v49 }
 0x2d2   :  { %v1127_v9 = vpop.permute.xlu0 %1126  ;;  %v4490_v1 = vpop.permute.xlu1 %1586 }
 0x2d3   :  { %5641 = vst [vmem:[#allocation50_spill] sm:$0xff] %v4490_v1  ;;  %v1255_v15 = vrot.slane %v1127_v9, %v4017_v33 }
 0x2d5   :  { %v1283_v3 = vsel %vm672_vm8, %v1255_v15, %v1282_v30  ;;  %v55_v15 = vld [vmem:[%s5584_s4 + $0x90] sm:$0xff] }
 0x2d6   :  { %v4500_v29 = vpop.permute.xlu0 %1601  ;;  %1293 = vadd.xlane.f32.xlu0 %v1292_v43  ;;  %v4505_v14 = vpop.permute.xlu1 %1597  ;;  %v1298_v56 = vsel %vm1288_vm10, %v1283_v3, 0.0  ;;  %v1980_v3 = vrot.slane %v55_v15, %v3902_v36 }
 0x2d7   :  { %5642 = vst [vmem:[#allocation51_spill] sm:$0xff] %v4500_v29  ;;  %1290 = vadd.xlane.f32.xlu1 %v1289_v40  ;;  %5643 = vst [vmem:[#allocation52_spill] sm:$0xff] %v4505_v14  ;;  %v1958_v40 = vrot.slane %v55_v15, %v3869_v7  ;;  %v1991_v7 = vrot.slane %v55_v15, %v3906_v38 }
 0x2da   :  { %v4509_v27 = vpop.permute.xlu0 %1612  ;;  %1296 = vadd.xlane.f32.xlu0 %v1295_v31  ;;  %v4515_v35 = vpop.permute.xlu1 %1608  ;;  %v1969_v31 = vrot.slane %v55_v15, %v3898_v34 }
 0x2de   :  { %v4513_v59 = vpop.permute.xlu0 %1623  ;;  %1299 = vadd.xlane.f32.xlu0 %v1298_v56  ;;  %v4519_v22 = vpop.permute.xlu1 %1619 }
 0x2e2   :  { %v4517_v52 = vpop.permute.xlu0 %1634  ;;  %v4528_v45 = vpop.permute.xlu1 %1630 }
 0x2e6   :  { %v4524_v4 = vpop.permute.xlu0 %1645  ;;  %v4534_v63 = vpop.permute.xlu1 %1641 }
 0x2e8   :  { %1861 = vbcast.lane.b32.xlu1 %v4418_v48, 256  ;;  %v1903_v48 = vrot.slane %v54_v6, %v3906_v38 }
 0x2ea   :  { %v4531_v32 = vpop.permute.xlu0 %1656  ;;  %v4539_v9 = vpop.permute.xlu1 %1652 }
 0x2ec   :  { %1872 = vbcast.lane.b32.xlu1 %v1870_v28, 256 }
 0x2ee   :  { %v4536_v25 = vpop.permute.xlu0 %1667  ;;  %v4545_v55 = vpop.permute.xlu1 %1663 }
 0x2ef   :  { %5644 = vst [vmem:[#allocation53_spill] sm:$0xff] %v4536_v25  ;;  %5646 = vst [vmem:[#allocation55_spill] sm:$0xff] %v4545_v55 }
 0x2f0   :  { %1883 = vbcast.lane.b32.xlu1 %v1881_v54, 256 }
 0x2f2   :  { %v4542_v13 = vpop.permute.xlu0 %1678  ;;  %v4550_v11 = vpop.permute.xlu1 %1674 }
 0x2f3   :  { %5645 = vst [vmem:[#allocation54_spill] sm:$0xff] %v4542_v13  ;;  %5648 = vst [vmem:[#allocation57_spill] sm:$0xff] %v4550_v11 }
 0x2f4   :  { %1876 = vbcast.lane.b32.xlu0 %v1870_v28, 264  ;;  %1894 = vbcast.lane.b32.xlu1 %v1892_v20, 256 }
 0x2f6   :  { %v4547_v8 = vpop.permute.xlu0 %1689  ;;  %v4559_v61 = vpop.permute.xlu1 %1685 }
 0x2f7   :  { %5647 = vst [vmem:[#allocation56_spill] sm:$0xff] %v4547_v8  ;;  %5649 = vst [vmem:[#allocation58_spill] sm:$0xff] %v4559_v61 }
 0x2f8   :  { %1887 = vbcast.lane.b32.xlu0 %v1881_v54, 264  ;;  %1905 = vbcast.lane.b32.xlu1 %v1903_v48, 256  ;;  %v2002_v54 = vrot.slane %v55_v15, %v3915_v41  ;;  %v2035_v41 = vrot.slane %v55_v15, %v3929_v49 }
 0x2fa   :  { %v4553_v43 = vpop.permute.xlu0 %1700  ;;  %v4564_v30 = vpop.permute.xlu1 %1696 }
 0x2fc   :  { %1898 = vbcast.lane.b32.xlu0 %v1892_v20, 264  ;;  %1916 = vbcast.lane.b32.xlu1 %v1914_v21, 256 }
 0x2fe   :  { %v4561_v17 = vpop.permute.xlu0 %1711  ;;  %v4570_v6 = vpop.permute.xlu1 %1707 }
 0x300   :  { %1909 = vbcast.lane.b32.xlu0 %v1903_v48, 264  ;;  %1927 = vbcast.lane.b32.xlu1 %v1925_v50, 256  ;;  %v2013_v48 = vrot.slane %v55_v15, %v3921_v44 }
 0x302   :  { %v4567_v56 = vpop.permute.xlu0 %1722  ;;  %v4575_v20 = vpop.permute.xlu1 %1718 }
 0x304   :  { %1920 = vbcast.lane.b32.xlu0 %v1914_v21, 264  ;;  %1938 = vbcast.lane.b32.xlu1 %v1936_v18, 256 }
 0x306   :  { %v4572_v28 = vpop.permute.xlu0 %1733 }
 0x308   :  { %1931 = vbcast.lane.b32.xlu0 %v1925_v50, 264  ;;  %1949 = vbcast.lane.b32.xlu1 %v1947_v0, 256  ;;  %v2024_v50 = vrot.slane %v55_v15, %v3925_v47 }
 0x30a   :  { %v4578_v21 = vpop.permute.xlu0 %1744 }
 0x30c   :  { %1942 = vbcast.lane.b32.xlu0 %v1936_v18, 264  ;;  %1960 = vbcast.lane.b32.xlu1 %v1958_v40, 256  ;;  %v4581_v18 = vpop.permute.xlu1 %1729 }
 0x310   :  { %1953 = vbcast.lane.b32.xlu0 %v1947_v0, 264  ;;  %1971 = vbcast.lane.b32.xlu1 %v1969_v31, 256  ;;  %v4583_v0 = vpop.permute.xlu0 %1755 }
 0x314   :  { %1964 = vbcast.lane.b32.xlu0 %v1958_v40, 264  ;;  %1982 = vbcast.lane.b32.xlu1 %v1980_v3, 256  ;;  %v4586_v40 = vpop.permute.xlu1 %1740 }
 0x318   :  { %1975 = vbcast.lane.b32.xlu0 %v1969_v31, 264  ;;  %1993 = vbcast.lane.b32.xlu1 %v1991_v7, 256  ;;  %v4588_v31 = vpop.permute.xlu0 %1766  ;;  %v4590_v44 = vpop.permute.xlu1 %1751 }
 0x31c   :  { %1986 = vbcast.lane.b32.xlu0 %v1980_v3, 264  ;;  %2004 = vbcast.lane.b32.xlu1 %v2002_v54, 256  ;;  %v4592_v3 = vpop.permute.xlu0 %1777  ;;  %v4594_v47 = vpop.permute.xlu1 %1762 }
 0x31d   :  { %5650 = vst [vmem:[#allocation59_spill] sm:$0xff] %v4592_v3 }
 0x320   :  { %1997 = vbcast.lane.b32.xlu0 %v1991_v7, 264  ;;  %2015 = vbcast.lane.b32.xlu1 %v2013_v48, 256  ;;  %v4596_v7 = vpop.permute.xlu0 %1788 }
 0x324   :  { %2008 = vbcast.lane.b32.xlu0 %v2002_v54, 264  ;;  %2026 = vbcast.lane.b32.xlu1 %v2024_v50, 256  ;;  %v4598_v54 = vpop.permute.xlu1 %1773  ;;  %v4600_v36 = vpop.permute.xlu0 %1799 }
 0x325   :  { %5651 = vst [vmem:[#allocation60_spill] sm:$0xff] %v4598_v54 }
 0x328   :  { %2019 = vbcast.lane.b32.xlu0 %v2013_v48, 264  ;;  %2037 = vbcast.lane.b32.xlu1 %v2035_v41, 256  ;;  %v4602_v49 = vpop.permute.xlu1 %1784  ;;  %v4604_v15 = vpop.permute.xlu0 %1810 }
 0x32c   :  { %2030 = vbcast.lane.b32.xlu0 %v2024_v50, 264  ;;  %v4606_v48 = vpop.permute.xlu1 %1795  ;;  %v4608_v50 = vpop.permute.xlu0 %1821 }
 0x330   :  { %2041 = vbcast.lane.b32.xlu0 %v2035_v41, 264  ;;  %v4610_v34 = vpop.permute.xlu1 %1806  ;;  %v4612_v38 = vpop.permute.xlu0 %1832 }
 0x334   :  { %v4614_v41 = vpop.permute.xlu1 %1817  ;;  %v4616_v33 = vpop.permute.xlu0 %1843 }
 0x338   :  { %v4618_v61 = vpop.permute.xlu1 %1828  ;;  %v4620_v8 = vpop.permute.xlu0 %1854 }
 0x33c   :  { %v4622_v11 = vpop.permute.xlu1 %1839  ;;  %v4624_v14 = vpop.permute.xlu0 %1865 }
 0x33d   :  { %5652 = vst [vmem:[#allocation61_spill] sm:$0xff] %v4624_v14 }
 0x340   :  { %v4626_v13 = vpop.permute.xlu1 %1850 }
 0x341   :  { %5653 = vst [vmem:[#allocation62_spill] sm:$0xff] %v4626_v13  ;;  %v5678_v13 = vld [vmem:[#allocation44_spill] sm:$0xff] }
 0x363   :  { %v1294_v29 = vpop.xlane.xlu0 %1293 }
 0x364   :  { %v4629_v54 = vadd.f32 %v4205_v24, %v1294_v29  ;;  %v1291_v3 = vpop.xlane.xlu1 %1290  ;;  %v5655_v29 = vld [vmem:[#allocation24_spill] sm:$0xff] }
 0x365   :  { %v4636_v25 = vadd.f32 %v4191_v12, %v1291_v3  ;;  %v5658_v3 = vld [vmem:[#allocation26_spill] sm:$0xff] }
 0x366   :  { %v2172_v55 = vmul.f32 %v4210_v37, %v4629_v54  ;;  %v2174_v1 = vmul.f32 %v4222_v19, %v4629_v54  ;;  %v2176_v2 = vmul.f32 %v4234_v60, %v4629_v54  ;;  %v2178_v37 = vmul.f32 %v4242_v26, %v4629_v54 }
 0x367   :  { %v2171_v14 = vmul.f32 %v4203_v23, %v4636_v25  ;;  %v2173_v24 = vmul.f32 %v4220_v53, %v4636_v25  ;;  %v2175_v12 = vmul.f32 %v4228_v58, %v4636_v25  ;;  %v2180_v19 = vmul.f32 %v4250_v46, %v4629_v54  ;;  %v4654_v53 = vpop.xlane.xlu0 %1296 }
 0x368   :  { %2431 = vperm.xlu0 %3789, %v2172_v55   ;;  %v2177_v23 = vmul.f32 %v4240_v62, %v4636_v25  ;;  %v2182_v60 = vmul.f32 %v4265_v39, %v4629_v54  ;;  %v2179_v26 = vmul.f32 %v4248_v42, %v4636_v25  ;;  %v2184_v58 = vmul.f32 %v4273_v57, %v4629_v54  ;;  %v5657_v55 = vld [vmem:[#allocation22_spill] sm:$0xff] }
 0x369   :  { %2428 = vperm.xlu1 %3790, %v2171_v14   ;;  %v2181_v46 = vmul.f32 %v4263_v51, %v4636_v25  ;;  %v2186_v62 = vmul.f32 %v4285_v16, %v4629_v54  ;;  %v2183_v39 = vmul.f32 %v4271_v10, %v4636_v25  ;;  %v2188_v42 = vmul.f32 %v4293_v5, %v4629_v54  ;;  %v4676_v14 = vpop.permute.xlu1 %1861 }
 0x36a   :  { %v2190_v16 = vmul.f32 %v5655_v29, %v4629_v54  ;;  %v2187_v10 = vmul.f32 %v5657_v55, %v4636_v25  ;;  %v2192_v5 = vmul.f32 %v5658_v3, %v4629_v54  ;;  %v5664_v29 = vld [vmem:[#allocation32_spill] sm:$0xff]  ;;  %v5665_v3 = vld [vmem:[#allocation29_spill] sm:$0xff] }
 0x36c   :  { %2437 = vperm.xlu0 %3789, %v2174_v1   ;;  %v5654_v1 = vld [vmem:[#allocation21_spill] sm:$0xff] }
 0x36d   :  { %2434 = vperm.xlu1 %3790, %v2173_v24   ;;  %v2185_v51 = vmul.f32 %v5654_v1, %v4636_v25  ;;  %5656 = vst [vmem:[#allocation21_spill] sm:$0xff] %v4676_v14  ;;  %v5663_v1 = vld [vmem:[#allocation27_spill] sm:$0xff] }
 0x370   :  { %2443 = vperm.xlu0 %3789, %v2176_v2   ;;  %v4664_v2 = vpop.xlane.xlu0 %1299 }
 0x371   :  { %2440 = vperm.xlu1 %3790, %v2175_v12   ;;  %v5659_v12 = vld [vmem:[#allocation23_spill] sm:$0xff] }
 0x374   :  { %2449 = vperm.xlu0 %3789, %v2178_v37   ;;  %v4670_v57 = vpop.permute.xlu0 %1876  ;;  %v4684_v37 = vpop.permute.xlu1 %1872 }
 0x375   :  { %2446 = vperm.xlu1 %3790, %v2177_v23   ;;  %v5660_v23 = vld [vmem:[#allocation28_spill] sm:$0xff] }
 0x378   :  { %2455 = vperm.xlu0 %3789, %v2180_v19   ;;  %v4682_v24 = vpop.permute.xlu0 %1887  ;;  %v2189_v19 = vmul.f32 %v5659_v12, %v4636_v25  ;;  %v5666_v12 = vld [vmem:[#allocation34_spill] sm:$0xff] }
 0x379   :  { %2452 = vperm.xlu1 %3790, %v2179_v26  }
 0x37c   :  { %2461 = vperm.xlu0 %3789, %v2182_v60   ;;  %v2194_v60 = vmul.f32 %v5660_v23, %v4629_v54  ;;  %v4690_v26 = vpop.permute.xlu0 %1898 }
 0x37d   :  { %2458 = vperm.xlu1 %3790, %v2181_v46  }
 0x380   :  { %2467 = vperm.xlu0 %3789, %v2184_v58   ;;  %v5661_v58 = vld [vmem:[#allocation25_spill] sm:$0xff]  ;;  %v4702_v55 = vpop.permute.xlu0 %1909 }
 0x381   :  { %2464 = vperm.xlu1 %3790, %v2183_v39   ;;  %v2191_v46 = vmul.f32 %v5661_v58, %v4636_v25 }
 0x384   :  { %2473 = vperm.xlu0 %3789, %v2186_v62   ;;  %v5662_v62 = vld [vmem:[#allocation30_spill] sm:$0xff]  ;;  %v4710_v23 = vpop.permute.xlu0 %1920 }
 0x385   :  { %2470 = vperm.xlu1 %3790, %v2185_v51   ;;  %v2196_v39 = vmul.f32 %v5662_v62, %v4629_v54  ;;  %v2193_v51 = vmul.f32 %v5663_v1, %v4636_v25  ;;  %v5669_v1 = vld [vmem:[#allocation33_spill] sm:$0xff] }
 0x388   :  { %2479 = vperm.xlu0 %3789, %v2188_v42   ;;  %v4696_v42 = vpop.permute.xlu1 %1883 }
 0x389   :  { %2476 = vperm.xlu1 %3790, %v2187_v10  }
 0x38c   :  { %2485 = vperm.xlu0 %3789, %v2190_v16   ;;  %v2198_v16 = vmul.f32 %v5664_v29, %v4629_v54  ;;  %v4704_v10 = vpop.permute.xlu1 %1894  ;;  %v5670_v29 = vld [vmem:[#allocation38_spill] sm:$0xff] }
 0x38d   :  { %2482 = vperm.xlu1 %3790, %v2189_v19   ;;  %v2200_v19 = vmul.f32 %v5666_v12, %v4629_v54  ;;  %v5671_v12 = vld [vmem:[#allocation35_spill] sm:$0xff] }
 0x390   :  { %2491 = vperm.xlu0 %3789, %v2192_v5   ;;  %v2195_v5 = vmul.f32 %v5665_v3, %v4636_v25  ;;  %v4722_v3 = vpop.permute.xlu0 %1931 }
 0x391   :  { %2488 = vperm.xlu1 %3790, %v2191_v46   ;;  %v5668_v46 = vld [vmem:[#allocation36_spill] sm:$0xff] }
 0x392   :  { %v2202_v62 = vmul.f32 %v5668_v46, %v4629_v54 }
 0x394   :  { %2497 = vperm.xlu0 %3789, %v2194_v60   ;;  %v5667_v60 = vld [vmem:[#allocation31_spill] sm:$0xff] }
 0x395   :  { %2494 = vperm.xlu1 %3790, %v2193_v51   ;;  %v2197_v58 = vmul.f32 %v5667_v60, %v4636_v25  ;;  %v2199_v51 = vmul.f32 %v5669_v1, %v4636_v25  ;;  %v5672_v60 = vld [vmem:[#allocation40_spill] sm:$0xff] }
 0x396   :  { %v2206_v46 = vmul.f32 %v5672_v60, %v4629_v54  ;;  %v2210_v60 = vmul.f32 %v5678_v13, %v4629_v54  ;;  %v5683_v13 = vld [vmem:[#allocation43_spill] sm:$0xff] }
 0x398   :  { %2503 = vperm.xlu0 %3789, %v2196_v39   ;;  %v4716_v39 = vpop.permute.xlu1 %1905 }
 0x399   :  { %2500 = vperm.xlu1 %3790, %v2195_v5  }
 0x39c   :  { %2509 = vperm.xlu0 %3789, %v2198_v16   ;;  %v2204_v16 = vmul.f32 %v5670_v29, %v4629_v54  ;;  %v4724_v5 = vpop.permute.xlu1 %1916  ;;  %v5675_v29 = vld [vmem:[#allocation42_spill] sm:$0xff] }
 0x39d   :  { %2506 = vperm.xlu1 %3790, %v2197_v58   ;;  %v4730_v58 = vpop.permute.xlu0 %1942  ;;  %v2208_v14 = vmul.f32 %v5675_v29, %v4629_v54  ;;  %v5681_v29 = vld [vmem:[#allocation46_spill] sm:$0xff] }
 0x39e   :  { %5673 = vst [vmem:[#allocation24_spill] sm:$0xff] %v4730_v58 }
 0x3a0   :  { %2515 = vperm.xlu0 %3789, %v2200_v19   ;;  %v2201_v19 = vmul.f32 %v5671_v12, %v4636_v25 }
 0x3a1   :  { %2512 = vperm.xlu1 %3790, %v2199_v51   ;;  %v4736_v51 = vpop.permute.xlu1 %1927 }
 0x3a2   :  { %5676 = vst [vmem:[#allocation22_spill] sm:$0xff] %v4736_v51  ;;  %v2212_v51 = vmul.f32 %v5681_v29, %v4629_v54 }
 0x3a4   :  { %2521 = vperm.xlu0 %3789, %v2202_v62   ;;  %v5674_v62 = vld [vmem:[#allocation37_spill] sm:$0xff] }
 0x3a5   :  { %2518 = vperm.xlu1 %3790, %v2201_v19   ;;  %v2203_v1 = vmul.f32 %v5674_v62, %v4636_v25  ;;  %v4742_v19 = vpop.permute.xlu0 %1953  ;;  %v5680_v62 = vld [vmem:[#allocation41_spill] sm:$0xff] }
 0x3a6   :  { %5679 = vst [vmem:[#allocation26_spill] sm:$0xff] %v4742_v19  ;;  %v2207_v58 = vmul.f32 %v5680_v62, %v4636_v25  ;;  %v5685_v62 = vld [vmem:[#allocation45_spill] sm:$0xff] }
 0x3a7   :  { %v2211_v29 = vmul.f32 %v5685_v62, %v4636_v25 }
 0x3a8   :  { %2527 = vperm.xlu0 %3789, %v2204_v16   ;;  %v5677_v16 = vld [vmem:[#allocation39_spill] sm:$0xff] }
 0x3a9   :  { %2524 = vperm.xlu1 %3790, %v2203_v1   ;;  %v2205_v12 = vmul.f32 %v5677_v16, %v4636_v25  ;;  %v4754_v16 = vpop.permute.xlu0 %1964 }
 0x3ac   :  { %2533 = vperm.xlu0 %3789, %v2206_v46   ;;  %v4744_v46 = vpop.permute.xlu1 %1938 }
 0x3ad   :  { %2530 = vperm.xlu1 %3790, %v2205_v12   ;;  %v2209_v12 = vmul.f32 %v5683_v13, %v4636_v25 }
 0x3b0   :  { %2539 = vperm.xlu0 %3789, %v2208_v14   ;;  %v5682_v14 = vld [vmem:[#allocation17_spill] sm:$0xff]  ;;  %v4760_v19 = vpop.permute.xlu1 %1949 }
 0x3b1   :  { %v4752_v1 = vadd.f32 %v5682_v14, %v4654_v53  ;;  %2536 = vperm.xlu1 %3790, %v2207_v58   ;;  %5684 = vst [vmem:[#allocation23_spill] sm:$0xff] %v4760_v19  ;;  %v4766_v58 = vpop.permute.xlu0 %1975  ;;  %v5686_v14 = vld [vmem:[#allocation47_spill] sm:$0xff] }
 0x3b2   :  { %v2213_v13 = vmul.f32 %v5686_v14, %v4636_v25 }
 0x3b3   :  { %v2237_v53 = vmul.f32 %v4570_v6, %v4752_v1  ;;  %v2253_v62 = vmul.f32 %v4606_v48, %v4752_v1  ;;  %v2255_v48 = vmul.f32 %v4610_v34, %v4752_v1  ;;  %v2269_v34 = vmul.f32 %v4696_v42, %v4752_v1 }
 0x3b4   :  { %2545 = vperm.xlu0 %3789, %v2210_v60   ;;  %v2235_v60 = vmul.f32 %v4564_v30, %v4752_v1  ;;  %v5687_v30 = vld [vmem:[#allocation18_spill] sm:$0xff]  ;;  %v2221_v42 = vmul.f32 %v4519_v22, %v4636_v25  ;;  %v2257_v22 = vmul.f32 %v4614_v41, %v4752_v1 }
 0x3b5   :  { %2542 = vperm.xlu1 %3790, %v2209_v12   ;;  %v4774_v19 = vadd.f32 %v5687_v30, %v4664_v2  ;;  %v2251_v12 = vmul.f32 %v4602_v49, %v4752_v1 }
 0x3b7   :  { %v2236_v6 = vmul.f32 %v4553_v43, %v4774_v19  ;;  %v2238_v2 = vmul.f32 %v4561_v17, %v4774_v19  ;;  %v2252_v43 = vmul.f32 %v4596_v7, %v4774_v19  ;;  %v2254_v17 = vmul.f32 %v4600_v36, %v4774_v19 }
 0x3b8   :  { %2551 = vperm.xlu0 %3789, %v2212_v51   ;;  %v4768_v51 = vpop.permute.xlu1 %1960  ;;  %v2240_v7 = vmul.f32 %v4567_v56, %v4774_v19  ;;  %v2256_v36 = vmul.f32 %v4604_v15, %v4774_v19  ;;  %v2268_v56 = vmul.f32 %v4670_v57, %v4774_v19  ;;  %v2270_v15 = vmul.f32 %v4682_v24, %v4774_v19 }
 0x3b9   :  { %2548 = vperm.xlu1 %3790, %v2211_v29   ;;  %v2220_v57 = vmul.f32 %v4509_v27, %v4629_v54  ;;  %v2222_v24 = vmul.f32 %v4513_v59, %v4629_v54  ;;  %v2242_v27 = vmul.f32 %v4572_v28, %v4774_v19  ;;  %v2283_v41 = vmul.f32 %v4768_v51, %v4752_v1 }
 0x3ba   :  { %v2258_v59 = vmul.f32 %v4608_v50, %v4774_v19  ;;  %v2272_v28 = vmul.f32 %v4690_v26, %v4774_v19  ;;  %v2223_v51 = vmul.f32 %v4528_v45, %v4636_v25  ;;  %v2284_v50 = vmul.f32 %v4754_v16, %v4774_v19 }
 0x3bb   :  { %v2286_v45 = vmul.f32 %v4766_v58, %v4774_v19  ;;  %v2259_v26 = vmul.f32 %v4618_v61, %v4752_v1  ;;  %v2273_v16 = vmul.f32 %v4716_v39, %v4752_v1  ;;  %v2244_v61 = vmul.f32 %v4578_v21, %v4774_v19 }
 0x3bc   :  { %2620 = vperm.xlu0 %3789, %v2235_v60   ;;  %v4778_v60 = vpop.permute.xlu0 %1986  ;;  %v1972_v29 = vpop.permute.xlu1 %1971  ;;  %v2225_v39 = vmul.f32 %v4534_v63, %v4636_v25  ;;  %v2274_v21 = vmul.f32 %v4702_v55, %v4774_v19  ;;  %v2261_v63 = vmul.f32 %v4622_v11, %v4752_v1  ;;  %v2275_v55 = vmul.f32 %v4724_v5, %v4752_v1  ;;  %v5688_v5 = vld [vmem:[#allocation48_spill] sm:$0xff] }
 0x3bd   :  { %2554 = vperm.xlu1 %3790, %v2213_v13   ;;  %v2246_v11 = vmul.f32 %v4583_v0, %v4774_v19  ;;  %v2276_v0 = vmul.f32 %v4710_v23, %v4774_v19  ;;  %v2264_v23 = vmul.f32 %v4620_v8, %v4774_v19 }
 0x3c0   :  { %2626 = vperm.xlu0 %3789, %v2237_v53   ;;  %v2239_v53 = vmul.f32 %v4575_v20, %v4752_v1  ;;  %v4788_v49 = vpop.permute.xlu0 %1997  ;;  %v4790_v14 = vpop.permute.xlu1 %1982  ;;  %v2267_v20 = vmul.f32 %v4684_v37, %v4752_v1  ;;  %v2219_v37 = vmul.f32 %v4515_v35, %v4636_v25  ;;  %v2241_v35 = vmul.f32 %v4581_v18, %v4752_v1 }
 0x3c1   :  { %2623 = vperm.xlu1 %3790, %v2236_v6   ;;  %v2271_v18 = vmul.f32 %v4704_v10, %v4752_v1  ;;  %v2285_v10 = vmul.f32 %v1972_v29, %v4752_v1  ;;  %v2243_v29 = vmul.f32 %v4586_v40, %v4752_v1  ;;  %v2224_v40 = vmul.f32 %v4517_v52, %v4629_v54 }
 0x3c2   :  { %v2287_v58 = vmul.f32 %v4790_v14, %v4752_v1  ;;  %v2260_v52 = vmul.f32 %v4612_v38, %v4774_v19  ;;  %v2245_v14 = vmul.f32 %v4590_v44, %v4752_v1  ;;  %v2288_v38 = vmul.f32 %v4778_v60, %v4774_v19 }
 0x3c3   :  { %v2226_v44 = vmul.f32 %v4524_v4, %v4629_v54  ;;  %v2262_v4 = vmul.f32 %v4616_v33, %v4774_v19  ;;  %v2290_v33 = vmul.f32 %v4788_v49, %v4774_v19  ;;  %v2278_v49 = vmul.f32 %v4722_v3, %v4774_v19 }
 0x3c4   :  { %2668 = vperm.xlu0 %3789, %v2251_v12   ;;  %v4796_v13 = vpop.permute.xlu0 %2008  ;;  %v4802_v30 = vpop.permute.xlu1 %1993 }
 0x3c5   :  { %2629 = vperm.xlu1 %3790, %v2238_v2   ;;  %v2289_v60 = vmul.f32 %v4802_v30, %v4752_v1  ;;  %v2228_v30 = vmul.f32 %v4531_v32, %v4629_v54  ;;  %v2227_v32 = vmul.f32 %v4539_v9, %v4636_v25  ;;  %v5693_v9 = vld [vmem:[#allocation62_spill] sm:$0xff] }
 0x3c6   :  { %v2263_v8 = vmul.f32 %v5693_v9, %v4752_v1  ;;  %v5703_v9 = vld [vmem:[#allocation50_spill] sm:$0xff] }
 0x3c8   :  { %2674 = vperm.xlu0 %3789, %v2253_v62   ;;  %v4808_v12 = vpop.permute.xlu0 %2019  ;;  %v4810_v6 = vpop.permute.xlu1 %2004 }
 0x3c9   :  { %2671 = vperm.xlu1 %3790, %v2252_v43  }
 0x3cc   :  { %2632 = vperm.xlu0 %3789, %v2239_v53   ;;  %v4816_v62 = vpop.permute.xlu0 %2030  ;;  %v4822_v2 = vpop.permute.xlu1 %2015 }
 0x3cd   :  { %2677 = vperm.xlu1 %3790, %v2254_v17  }
 0x3d0   :  { %2680 = vperm.xlu0 %3789, %v2255_v48   ;;  %v4828_v53 = vpop.permute.xlu0 %2041  ;;  %v4830_v43 = vpop.permute.xlu1 %2026 }
 0x3d1   :  { %2635 = vperm.xlu1 %3790, %v2240_v7  }
 0x3d4   :  { %2716 = vperm.xlu0 %3789, %v2267_v20   ;;  %v4842_v17 = vpop.permute.xlu1 %2037 }
 0x3d5   :  { %2683 = vperm.xlu1 %3790, %v2256_v36  }
 0x3d8   :  { %2722 = vperm.xlu0 %3789, %v2269_v34  }
 0x3d9   :  { %2719 = vperm.xlu1 %3790, %v2268_v56  }
 0x3dc   :  { %2572 = vperm.xlu0 %3789, %v2219_v37  }
 0x3dd   :  { %2725 = vperm.xlu1 %3790, %v2270_v15  }
 0x3e0   :  { %2578 = vperm.xlu0 %3789, %v2221_v42  }
 0x3e1   :  { %2575 = vperm.xlu1 %3790, %v2220_v57  }
 0x3e4   :  { %2638 = vperm.xlu0 %3789, %v2241_v35  }
 0x3e5   :  { %2581 = vperm.xlu1 %3790, %v2222_v24  }
 0x3e7   :  { %v4836_v48 = vpop.permute.xlu0 %2431 }
 0x3e8   :  { %2686 = vperm.xlu0 %3789, %v2257_v22   ;;  %v4850_v7 = vpop.permute.xlu1 %2428 }
 0x3e9   :  { %2641 = vperm.xlu1 %3790, %v2242_v27  }
 0x3eb   :  { %v4844_v20 = vpop.permute.xlu0 %2437 }
 0x3ec   :  { %2728 = vperm.xlu0 %3789, %v2271_v18   ;;  %v4857_v36 = vpop.permute.xlu1 %2434 }
 0x3ed   :  { %2689 = vperm.xlu1 %3790, %v2258_v59  }
 0x3ef   :  { %v4852_v34 = vpop.permute.xlu0 %2443 }
 0x3f0   :  { %2764 = vperm.xlu0 %3789, %v2283_v41   ;;  %v4865_v56 = vpop.permute.xlu1 %2440 }
 0x3f1   :  { %2731 = vperm.xlu1 %3790, %v2272_v28  }
 0x3f3   :  { %v4859_v37 = vpop.permute.xlu0 %2449 }
 0x3f4   :  { %2770 = vperm.xlu0 %3789, %v2285_v10   ;;  %v4873_v15 = vpop.permute.xlu1 %2446 }
 0x3f5   :  { %2767 = vperm.xlu1 %3790, %v2284_v50  }
 0x3f7   :  { %v4867_v42 = vpop.permute.xlu0 %2455 }
 0x3f8   :  { %2584 = vperm.xlu0 %3789, %v2223_v51   ;;  %v4881_v57 = vpop.permute.xlu1 %2452 }
 0x3f9   :  { %2773 = vperm.xlu1 %3790, %v2286_v45  }
 0x3fb   :  { %v4875_v35 = vpop.permute.xlu0 %2461 }
 0x3fc   :  { %2644 = vperm.xlu0 %3789, %v2243_v29   ;;  %v4889_v24 = vpop.permute.xlu1 %2458 }
 0x3fd   :  { %2587 = vperm.xlu1 %3790, %v2224_v40  }
 0x3ff   :  { %v4883_v22 = vpop.permute.xlu0 %2467 }
 0x400   :  { %2692 = vperm.xlu0 %3789, %v2259_v26   ;;  %v4897_v27 = vpop.permute.xlu1 %2464 }
 0x401   :  { %2647 = vperm.xlu1 %3790, %v2244_v61   ;;  %v2214_v61 = vmul.f32 %v5688_v5, %v4629_v54 }
 0x403   :  { %v4891_v18 = vpop.permute.xlu0 %2473 }
 0x404   :  { %2734 = vperm.xlu0 %3789, %v2273_v16   ;;  %v4905_v59 = vpop.permute.xlu1 %2470 }
 0x405   :  { %2695 = vperm.xlu1 %3790, %v2260_v52  }
 0x407   :  { %v4899_v41 = vpop.permute.xlu0 %2479 }
 0x408   :  { %2776 = vperm.xlu0 %3789, %v2287_v58   ;;  %v4913_v28 = vpop.permute.xlu1 %2476 }
 0x409   :  { %2737 = vperm.xlu1 %3790, %v2274_v21  }
 0x40b   :  { %v4907_v10 = vpop.permute.xlu0 %2485 }
 0x40c   :  { %2590 = vperm.xlu0 %3789, %v2225_v39   ;;  %v4921_v50 = vpop.permute.xlu1 %2482 }
 0x40d   :  { %2779 = vperm.xlu1 %3790, %v2288_v38  }
 0x40f   :  { %v4915_v51 = vpop.permute.xlu0 %2491 }
 0x410   :  { %2650 = vperm.xlu0 %3789, %v2245_v14   ;;  %v4929_v45 = vpop.permute.xlu1 %2488  ;;  %v2248_v14 = vmul.f32 %v4588_v31, %v4774_v19  ;;  %v2247_v31 = vmul.f32 %v4594_v47, %v4752_v1  ;;  %v5696_v47 = vld [vmem:[#allocation22_spill] sm:$0xff] }
 0x411   :  { %2593 = vperm.xlu1 %3790, %v2226_v44   ;;  %v2277_v3 = vmul.f32 %v5696_v47, %v4752_v1 }
 0x413   :  { %v4923_v29 = vpop.permute.xlu0 %2497 }
 0x414   :  { %2698 = vperm.xlu0 %3789, %v2261_v63   ;;  %v4937_v40 = vpop.permute.xlu1 %2494 }
 0x415   :  { %2653 = vperm.xlu1 %3790, %v2246_v11  }
 0x417   :  { %v4931_v26 = vpop.permute.xlu0 %2503 }
 0x418   :  { %2740 = vperm.xlu0 %3789, %v2275_v55   ;;  %v4945_v58 = vpop.permute.xlu1 %2500 }
 0x419   :  { %2701 = vperm.xlu1 %3790, %v2262_v4   ;;  %v2292_v4 = vmul.f32 %v4796_v13, %v4774_v19  ;;  %v2291_v13 = vmul.f32 %v4810_v6, %v4752_v1  ;;  %v5707_v6 = vld [vmem:[#allocation55_spill] sm:$0xff] }
 0x41b   :  { %v4939_v16 = vpop.permute.xlu0 %2509 }
 0x41c   :  { %2782 = vperm.xlu0 %3789, %v2289_v60   ;;  %v4953_v39 = vpop.permute.xlu1 %2506 }
 0x41d   :  { %2743 = vperm.xlu1 %3790, %v2276_v0   ;;  %v5697_v0 = vld [vmem:[#allocation49_spill] sm:$0xff] }
 0x41f   :  { %v4947_v52 = vpop.permute.xlu0 %2515 }
 0x420   :  { %2557 = vperm.xlu0 %3789, %v2214_v61   ;;  %v4961_v38 = vpop.permute.xlu1 %2512 }
 0x421   :  { %2785 = vperm.xlu1 %3790, %v2290_v33  }
 0x423   :  { %v4955_v21 = vpop.permute.xlu0 %2521 }
 0x424   :  { %2599 = vperm.xlu0 %3789, %v2228_v30   ;;  %v4969_v44 = vpop.permute.xlu1 %2518  ;;  %v2216_v30 = vmul.f32 %v5697_v0, %v4629_v54 }
 0x425   :  { %2596 = vperm.xlu1 %3790, %v2227_v32   ;;  %v5700_v32 = vld [vmem:[#allocation53_spill] sm:$0xff] }
 0x427   :  { %v4963_v63 = vpop.permute.xlu0 %2527 }
 0x428   :  { %5689 = vst [vmem:[#allocation28_spill] sm:$0xff] %v4963_v63  ;;  %2659 = vperm.xlu0 %3789, %v2248_v14   ;;  %v4977_v11 = vpop.permute.xlu1 %2524 }
 0x429   :  { %5691 = vst [vmem:[#allocation30_spill] sm:$0xff] %v4977_v11  ;;  %2656 = vperm.xlu1 %3790, %v2247_v31  }
 0x42b   :  { %v4971_v55 = vpop.permute.xlu0 %2533 }
 0x42c   :  { %5690 = vst [vmem:[#allocation25_spill] sm:$0xff] %v4971_v55  ;;  %2707 = vperm.xlu0 %3789, %v2264_v23   ;;  %v4985_v5 = vpop.permute.xlu1 %2530  ;;  %v2230_v23 = vmul.f32 %v5700_v32, %v4629_v54 }
 0x42d   :  { %5694 = vst [vmem:[#allocation32_spill] sm:$0xff] %v4985_v5  ;;  %2704 = vperm.xlu1 %3790, %v2263_v8   ;;  %v2215_v8 = vmul.f32 %v5703_v9, %v4636_v25  ;;  %v5710_v9 = vld [vmem:[#allocation60_spill] sm:$0xff] }
 0x42f   :  { %v4979_v60 = vpop.permute.xlu0 %2539 }
 0x430   :  { %5692 = vst [vmem:[#allocation27_spill] sm:$0xff] %v4979_v60  ;;  %2749 = vperm.xlu0 %3789, %v2278_v49   ;;  %v4993_v33 = vpop.permute.xlu1 %2536 }
 0x431   :  { %5698 = vst [vmem:[#allocation34_spill] sm:$0xff] %v4993_v33  ;;  %2746 = vperm.xlu1 %3790, %v2277_v3  }
 0x433   :  { %v4987_v61 = vpop.permute.xlu0 %2545 }
 0x434   :  { %5695 = vst [vmem:[#allocation29_spill] sm:$0xff] %v4987_v61  ;;  %2791 = vperm.xlu0 %3789, %v2292_v4   ;;  %v5001_v31 = vpop.permute.xlu1 %2542  ;;  %v5704_v4 = vld [vmem:[#allocation59_spill] sm:$0xff] }
 0x435   :  { %5701 = vst [vmem:[#allocation36_spill] sm:$0xff] %v5001_v31  ;;  %2788 = vperm.xlu1 %3790, %v2291_v13   ;;  %v2250_v47 = vmul.f32 %v5704_v4, %v4774_v19  ;;  %v5708_v13 = vld [vmem:[#allocation61_spill] sm:$0xff]  ;;  %v2249_v4 = vmul.f32 %v5710_v9, %v4752_v1  ;;  %v2279_v9 = vmul.f32 %v4744_v46, %v4752_v1  ;;  %v5717_v46 = vld [vmem:[#allocation52_spill] sm:$0xff] }
 0x436   :  { %v2266_v32 = vmul.f32 %v5708_v13, %v4774_v19 }
 0x437   :  { %v4995_v14 = vpop.permute.xlu0 %2551 }
 0x438   :  { %5699 = vst [vmem:[#allocation31_spill] sm:$0xff] %v4995_v14  ;;  %2563 = vperm.xlu0 %3789, %v2216_v30   ;;  %v5009_v3 = vpop.permute.xlu1 %2548  ;;  %v2229_v30 = vmul.f32 %v5707_v6, %v4636_v25  ;;  %v5713_v6 = vld [vmem:[#allocation21_spill] sm:$0xff] }
 0x439   :  { %5705 = vst [vmem:[#allocation38_spill] sm:$0xff] %v5009_v3  ;;  %2560 = vperm.xlu1 %3790, %v2215_v8   ;;  %v5711_v8 = vld [vmem:[#allocation24_spill] sm:$0xff]  ;;  %v2265_v13 = vmul.f32 %v5713_v6, %v4752_v1  ;;  %v5716_v6 = vld [vmem:[#allocation54_spill] sm:$0xff] }
 0x43a   :  { %v2280_v3 = vmul.f32 %v5711_v8, %v4774_v19 }
 0x43b   :  { %v5003_v49 = vpop.permute.xlu0 %2620 }
 0x43c   :  { %5702 = vst [vmem:[#allocation33_spill] sm:$0xff] %v5003_v49  ;;  %2605 = vperm.xlu0 %3789, %v2230_v23   ;;  %v5017_v14 = vpop.permute.xlu1 %2554 }
 0x43d   :  { %5709 = vst [vmem:[#allocation40_spill] sm:$0xff] %v5017_v14  ;;  %2602 = vperm.xlu1 %3790, %v2229_v30   ;;  %v2294_v30 = vmul.f32 %v4808_v12, %v4774_v19  ;;  %v2293_v12 = vmul.f32 %v4822_v2, %v4752_v1  ;;  %v5719_v2 = vld [vmem:[#allocation57_spill] sm:$0xff] }
 0x43f   :  { %v5011_v0 = vpop.permute.xlu0 %2626 }
 0x440   :  { %5706 = vst [vmem:[#allocation35_spill] sm:$0xff] %v5011_v0  ;;  %2665 = vperm.xlu0 %3789, %v2250_v47   ;;  %v5025_v31 = vpop.permute.xlu1 %2623 }
 0x441   :  { %5712 = vst [vmem:[#allocation37_spill] sm:$0xff] %v5025_v31  ;;  %2662 = vperm.xlu1 %3790, %v2249_v4   ;;  %v5715_v4 = vld [vmem:[#allocation51_spill] sm:$0xff] }
 0x442   :  { %v2218_v8 = vmul.f32 %v5715_v4, %v4629_v54  ;;  %v2217_v4 = vmul.f32 %v5717_v46, %v4636_v25  ;;  %v5720_v46 = vld [vmem:[#allocation23_spill] sm:$0xff] }
 0x443   :  { %v5019_v23 = vpop.permute.xlu0 %2668 }
 0x444   :  { %2713 = vperm.xlu0 %3789, %v2266_v32   ;;  %v5033_v14 = vpop.permute.xlu1 %2629 }
 0x445   :  { %2710 = vperm.xlu1 %3790, %v2265_v13   ;;  %v2232_v13 = vmul.f32 %v5716_v6, %v4629_v54  ;;  %v2231_v6 = vmul.f32 %v5719_v2, %v4636_v25  ;;  %v2298_v2 = vmul.f32 %v4828_v53, %v4774_v19 }
 0x447   :  { %v5027_v47 = vpop.permute.xlu0 %2674 }
 0x448   :  { %2755 = vperm.xlu0 %3789, %v2280_v3   ;;  %v5041_v61 = vpop.permute.xlu1 %2671 }
 0x449   :  { %2752 = vperm.xlu1 %3790, %v2279_v9   ;;  %v5718_v9 = vld [vmem:[#allocation26_spill] sm:$0xff] }
 0x44a   :  { %v2282_v33 = vmul.f32 %v5718_v9, %v4774_v19  ;;  %v2281_v9 = vmul.f32 %v5720_v46, %v4752_v1 }
 0x44b   :  { %v5035_v32 = vpop.permute.xlu0 %2632 }
 0x44c   :  { %5714 = vst [vmem:[#allocation42_spill] sm:$0xff] %v5035_v32  ;;  %2797 = vperm.xlu0 %3789, %v2294_v30   ;;  %v5049_v11 = vpop.permute.xlu1 %2677 }
 0x44d   :  { %2794 = vperm.xlu1 %3790, %v2293_v12   ;;  %v2296_v12 = vmul.f32 %v4816_v62, %v4774_v19  ;;  %v2295_v62 = vmul.f32 %v4830_v43, %v4752_v1  ;;  %v2297_v43 = vmul.f32 %v4842_v17, %v4752_v1 }
 0x44f   :  { %v5043_v3 = vpop.permute.xlu0 %2680 }
 0x450   :  { %2569 = vperm.xlu0 %3789, %v2218_v8   ;;  %v5057_v60 = vpop.permute.xlu1 %2635 }
 0x451   :  { %2566 = vperm.xlu1 %3790, %v2217_v4   ;;  %v5721_v4 = vld [vmem:[#allocation56_spill] sm:$0xff] }
 0x452   :  { %v2234_v5 = vmul.f32 %v5721_v4, %v4629_v54  ;;  %v5723_v54 = vld [vmem:[#allocation58_spill] sm:$0xff] }
 0x453   :  { %v5051_v30 = vpop.permute.xlu0 %2716  ;;  %v2233_v46 = vmul.f32 %v5723_v54, %v4636_v25  ;;  %v5726_v54 = vld [vmem:[#allocation15_spill] sm:$0xff] }
 0x454   :  { %2611 = vperm.xlu0 %3789, %v2232_v13   ;;  %v5065_v63 = vpop.permute.xlu1 %2683  ;;  %v2904_v17 = vrot.slane %v4929_v45, %v5726_v54  ;;  %v2886_v32 = vrot.slane %v4913_v28, %v5726_v54  ;;  %v2814_v28 = vrot.slane %v4850_v7, %v5726_v54  ;;  %v2940_v7 = vrot.slane %v4961_v38, %v5726_v54 }
 0x455   :  { %2608 = vperm.xlu1 %3790, %v2231_v6   ;;  %v2949_v0 = vrot.slane %v4969_v44, %v5726_v54 }
 0x457   :  { %v5059_v8 = vpop.permute.xlu0 %2722 }
 0x458   :  { %2761 = vperm.xlu0 %3789, %v2282_v33   ;;  %v5073_v55 = vpop.permute.xlu1 %2719 }
 0x459   :  { %2758 = vperm.xlu1 %3790, %v2281_v9  }
 0x45b   :  { %v5067_v13 = vpop.permute.xlu0 %2572 }
 0x45c   :  { %2803 = vperm.xlu0 %3789, %v2296_v12   ;;  %v5081_v6 = vpop.permute.xlu1 %2725 }
 0x45d   :  { %2800 = vperm.xlu1 %3790, %v2295_v62  }
 0x45f   :  { %v5075_v33 = vpop.permute.xlu0 %2578 }
 0x460   :  { %2617 = vperm.xlu0 %3789, %v2234_v5   ;;  %v5087_v4 = vpop.permute.xlu1 %2575 }
 0x461   :  { %2614 = vperm.xlu1 %3790, %v2233_v46   ;;  %v2895_v46 = vrot.slane %v4921_v50, %v5726_v54  ;;  %v2913_v50 = vrot.slane %v4937_v40, %v5726_v54 }
 0x463   :  { %v5083_v12 = vpop.permute.xlu0 %2638 }
 0x464   :  { %5722 = vst [vmem:[#allocation39_spill] sm:$0xff] %v5083_v12  ;;  %2809 = vperm.xlu0 %3789, %v2298_v2   ;;  %v5093_v5 = vpop.permute.xlu1 %2581  ;;  %v5725_v2 = vld [vmem:[#allocation16_spill] sm:$0xff] }
 0x465   :  { %2806 = vperm.xlu1 %3790, %v2297_v43   ;;  %v2899_v25 = vrot.slane %v4907_v10, %v5725_v2  ;;  %v2908_v1 = vrot.slane %v4915_v51, %v5725_v2  ;;  %v2890_v49 = vrot.slane %v4899_v41, %v5725_v2  ;;  %v2917_v10 = vrot.slane %v4923_v29, %v5725_v2 }
 0x466   :  { %v2827_v51 = vrot.slane %v4844_v20, %v5725_v2  ;;  %v2926_v45 = vrot.slane %v4931_v26, %v5725_v2  ;;  %v2922_v41 = vrot.slane %v4945_v58, %v5726_v54  ;;  %v2935_v40 = vrot.slane %v4939_v16, %v5725_v2 }
 0x467   :  { %v5089_v9 = vpop.permute.xlu0 %2686  ;;  %v2900_v29 = vsel %vm523_vm1, %v2899_v25, %v2895_v46  ;;  %v2823_v20 = vrot.slane %v4857_v36, %v5726_v54  ;;  %v2909_v26 = vsel %vm523_vm1, %v2908_v1, %v2904_v17  ;;  %v2944_v58 = vrot.slane %v4947_v52, %v5725_v2 }
 0x468   :  { %v5097_v53 = vpop.permute.xlu1 %2641  ;;  %v2891_v46 = vsel %vm523_vm1, %v2890_v49, %v2886_v32  ;;  %v2918_v16 = vsel %vm523_vm1, %v2917_v10, %v2913_v50  ;;  %v2836_v36 = vrot.slane %v4852_v34, %v5725_v2  ;;  %v2832_v52 = vrot.slane %v4865_v56, %v5726_v54 }
 0x469   :  { %5724 = vst [vmem:[#allocation44_spill] sm:$0xff] %v5097_v53  ;;  %v2818_v53 = vrot.slane %v4836_v48, %v5725_v2  ;;  %v2931_v48 = vrot.slane %v4953_v39, %v5726_v54  ;;  %v2953_v39 = vrot.slane %v4955_v21, %v5725_v2  ;;  %v3394_v1 = vsel %vm660_vm2, %v2900_v29, %v2891_v46 }
 0x46a   :  { %v2927_v38 = vsel %vm523_vm1, %v2926_v45, %v2922_v41  ;;  %v3395_v32 = vsel %vm662_vm3, %v2909_v26, %v3394_v1  ;;  %v2828_v10 = vsel %vm523_vm1, %v2827_v51, %v2823_v20  ;;  %v2845_v44 = vrot.slane %v4859_v37, %v5725_v2 }
 0x46b   :  { %v5095_v19 = vpop.permute.xlu0 %2728  ;;  %v2819_v49 = vsel %vm523_vm1, %v2818_v53, %v2814_v28  ;;  %v2936_v17 = vsel %vm523_vm1, %v2935_v40, %v2931_v48  ;;  %v3396_v34 = vsel %vm664_vm4, %v2918_v16, %v3395_v32  ;;  %v2945_v56 = vsel %vm523_vm1, %v2944_v58, %v2940_v7 }
 0x46c   :  { %v5105_v12 = vpop.permute.xlu1 %2689  ;;  %v2841_v45 = vrot.slane %v4873_v15, %v5726_v54  ;;  %v2854_v53 = vrot.slane %v4867_v42, %v5725_v2  ;;  %v3397_v41 = vsel %vm666_vm5, %v2927_v38, %v3396_v34  ;;  %v2954_v28 = vsel %vm523_vm1, %v2953_v39, %v2949_v0 }
 0x46d   :  { %v2837_v51 = vsel %vm523_vm1, %v2836_v36, %v2832_v52  ;;  %v2850_v37 = vrot.slane %v4881_v57, %v5726_v54  ;;  %v3398_v40 = vsel %vm668_vm6, %v2936_v17, %v3397_v41  ;;  %v3387_v48 = vsel %vm660_vm2, %v2828_v10, %v2819_v49 }
 0x46e   :  { %v3399_v15 = vsel %vm670_vm7, %v2945_v56, %v3398_v40  ;;  %v3388_v57 = vsel %vm662_vm3, %v2837_v51, %v3387_v48  ;;  %v2846_v46 = vsel %vm523_vm1, %v2845_v44, %v2841_v45  ;;  %v2863_v16 = vrot.slane %v4875_v35, %v5725_v2 }
 0x46f   :  { %v5099_v62 = vpop.permute.xlu0 %2764  ;;  %v3400_v7 = vsel %vm672_vm8, %v2954_v28, %v3399_v15  ;;  %v2859_v39 = vrot.slane %v4889_v24, %v5726_v54  ;;  %v2855_v36 = vsel %vm523_vm1, %v2854_v53, %v2850_v37  ;;  %v2868_v1 = vrot.slane %v4897_v27, %v5726_v54 }
 0x470   :  { %v5134_v31 = vpop.permute.xlu1 %2731  ;;  %v3318_v42 = vrot.slane %v5099_v62, %v5726_v54  ;;  %v2872_v62 = vrot.slane %v4883_v22, %v5725_v2  ;;  %v2881_v38 = vrot.slane %v4891_v18, %v5725_v2  ;;  %v3454_v24 = vsel %vm683_vm9, %v3400_v7, 0.0 }
 0x471   :  { %v2877_v32 = vrot.slane %v4905_v59, %v5726_v54  ;;  %v3187_v22 = vrot.slane %v5049_v11, %v5725_v2  ;;  %v3389_v18 = vsel %vm664_vm4, %v2846_v46, %v3388_v57  ;;  %v2864_v10 = vsel %vm523_vm1, %v2863_v16, %v2859_v39 }
 0x472   :  { %v3183_v44 = vrot.slane %v5027_v47, %v5726_v54  ;;  %v3178_v34 = vrot.slane %v5041_v61, %v5725_v2  ;;  %v3196_v59 = vrot.slane %v5065_v63, %v5725_v2  ;;  %v2873_v56 = vsel %vm523_vm1, %v2872_v62, %v2868_v1 }
 0x473   :  { %v2771_v43 = vpop.permute.xlu0 %2770  ;;  %v3205_v45 = vrot.slane %v5105_v12, %v5725_v2  ;;  %v3174_v47 = vrot.slane %v5019_v23, %v5726_v54  ;;  %v3192_v63 = vrot.slane %v5043_v3, %v5726_v54  ;;  %v2882_v28 = vsel %vm523_vm1, %v2881_v38, %v2877_v32 }
 0x474   :  { %v2768_v21 = vpop.permute.xlu1 %2767  ;;  %v3327_v26 = vrot.slane %v2771_v43, %v5726_v54  ;;  %v3188_v61 = vsel %vm523_vm1, %v3187_v22, %v3183_v44  ;;  %v3201_v51 = vrot.slane %v5089_v9, %v5726_v54  ;;  %v3259_v23 = vrot.slane %v5081_v6, %v5725_v2 }
 0x475   :  { %v3322_v29 = vrot.slane %v2768_v21, %v5725_v2  ;;  %v3179_v12 = vsel %vm523_vm1, %v3178_v34, %v3174_v47  ;;  %v3264_v46 = vrot.slane %v5095_v19, %v5726_v54  ;;  %v3043_v38 = vrot.slane %v5093_v5, %v5725_v2 }
 0x476   :  { %v3422_v48 = vsel %vm660_vm2, %v3188_v61, %v3179_v12  ;;  %v3206_v3 = vsel %vm523_vm1, %v3205_v45, %v3201_v51  ;;  %v3030_v5 = vrot.slane %v5067_v13, %v5726_v54 }
 0x477   :  { %v2585_v25 = vpop.permute.xlu0 %2584  ;;  %v3323_v43 = vsel %vm523_vm1, %v3322_v29, %v3318_v42  ;;  %v3197_v29 = vsel %vm523_vm1, %v3196_v59, %v3192_v63  ;;  %v3255_v42 = vrot.slane %v5059_v8, %v5726_v54 }
 0x478   :  { %v2774_v20 = vpop.permute.xlu1 %2773  ;;  %v3048_v17 = vrot.slane %v2585_v25, %v5726_v54  ;;  %v3390_v25 = vsel %vm666_vm5, %v2855_v36, %v3389_v18  ;;  %v3423_v57 = vsel %vm662_vm3, %v3197_v29, %v3422_v48 }
 0x479   :  { %v3331_v0 = vrot.slane %v2774_v20, %v5725_v2  ;;  %v3391_v37 = vsel %vm668_vm6, %v2864_v10, %v3390_v25  ;;  %v3268_v20 = vrot.slane %v5134_v31, %v5725_v2  ;;  %v3246_v31 = vrot.slane %v5051_v30, %v5726_v54 }
 0x47a   :  { %v3392_v40 = vsel %vm670_vm7, %v2873_v56, %v3391_v37  ;;  %v3260_v16 = vsel %vm523_vm1, %v3259_v23, %v3255_v42  ;;  %v3424_v8 = vsel %vm664_vm4, %v3206_v3, %v3423_v57 }
 0x47b   :  { %v5163_v50 = vpop.permute.xlu0 %2644  ;;  %v3332_v52 = vsel %vm523_vm1, %v3331_v0, %v3327_v26  ;;  %v3393_v9 = vsel %vm672_vm8, %v2882_v28, %v3392_v40  ;;  %v3250_v26 = vrot.slane %v5073_v55, %v5725_v2  ;;  %v3269_v55 = vsel %vm523_vm1, %v3268_v20, %v3264_v46 }
 0x47c   :  { %v5199_v35 = vsel %vm660_vm2, %v3332_v52, %v3323_v43  ;;  %v2588_v49 = vpop.permute.xlu1 %2587  ;;  %v3451_v62 = vsel %vm683_vm9, %v3393_v9, 0.0 }
 0x47d   :  { %v3052_v21 = vrot.slane %v2588_v49, %v5725_v2  ;;  %v3251_v43 = vsel %vm523_vm1, %v3250_v26, %v3246_v31  ;;  %v3115_v31 = vrot.slane %v5033_v14, %v5725_v2 }
 0x47e   :  { %v3429_v1 = vsel %vm660_vm2, %v3260_v16, %v3251_v43  ;;  %v3124_v16 = vrot.slane %v5057_v60, %v5725_v2  ;;  %v5729_v43 = vld [vmem:[#allocation44_spill] sm:$0xff]  ;;  %v5731_v60 = vld [vmem:[#allocation33_spill] sm:$0xff] }
 0x47f   :  { %v2693_v58 = vpop.permute.xlu0 %2692  ;;  %v5217_v11 = vsel %vm523_vm1, %v3052_v21, %v3048_v17  ;;  %v3430_v49 = vsel %vm662_vm3, %v3269_v55, %v3429_v1  ;;  %v3039_v17 = vrot.slane %v5075_v33, %v5726_v54  ;;  %v3034_v21 = vrot.slane %v5087_v4, %v5725_v2  ;;  %v5730_v1 = vld [vmem:[#allocation42_spill] sm:$0xff] }
 0x480   :  { %v5223_v53 = vpop.permute.xlu1 %2647  ;;  %v3210_v6 = vrot.slane %v2693_v58, %v5726_v54 }
 0x481   :  { %v3044_v44 = vsel %vm523_vm1, %v3043_v38, %v3039_v17  ;;  %v3035_v25 = vsel %vm523_vm1, %v3034_v21, %v3030_v5  ;;  %v3120_v38 = vrot.slane %v5730_v1, %v5726_v54  ;;  %v3142_v14 = vrot.slane %v5223_v53, %v5725_v2 }
 0x482   :  { %v3408_v47 = vsel %vm660_vm2, %v3044_v44, %v3035_v25 }
 0x483   :  { %v2735_v27 = vpop.permute.xlu0 %2734  ;;  %3455 = vadd.xlane.f32.xlu0 %v3454_v24  ;;  %v3409_v13 = vsel %vm662_vm3, %v5217_v11, %v3408_v47 }
 0x484   :  { %v2696_v15 = vpop.permute.xlu1 %2695  ;;  %v3273_v19 = vrot.slane %v2735_v27, %v5726_v54 }
 0x485   :  { %v3214_v0 = vrot.slane %v2696_v15, %v5725_v2 }
 0x487   :  { %v2777_v41 = vpop.permute.xlu0 %2776  ;;  %v3215_v39 = vsel %vm523_vm1, %v3214_v0, %v3210_v6 }
 0x488   :  { %v5260_v58 = vsel %vm666_vm5, %v3215_v39, %v3424_v8  ;;  %v2738_v36 = vpop.permute.xlu1 %2737  ;;  %v3336_v27 = vrot.slane %v2777_v41, %v5726_v54  ;;  %v5727_v39 = vld [vmem:[#allocation35_spill] sm:$0xff] }
 0x489   :  { %v3277_v30 = vrot.slane %v2738_v36, %v5725_v2  ;;  %3452 = vadd.xlane.f32.xlu1 %v3451_v62  ;;  %v3111_v55 = vrot.slane %v5727_v39, %v5726_v54  ;;  %v5728_v36 = vld [vmem:[#allocation37_spill] sm:$0xff] }
 0x48a   :  { %v3106_v62 = vrot.slane %v5728_v36, %v5725_v2 }
 0x48b   :  { %v2591_v7 = vpop.permute.xlu0 %2590  ;;  %v3278_v24 = vsel %vm523_vm1, %v3277_v30, %v3273_v19  ;;  %v3133_v19 = vrot.slane %v5729_v43, %v5725_v2 }
 0x48c   :  { %v5274_v32 = vsel %vm664_vm4, %v3278_v24, %v3430_v49  ;;  %v2780_v22 = vpop.permute.xlu1 %2779  ;;  %v3057_v4 = vrot.slane %v2591_v7, %v5726_v54  ;;  %v3102_v49 = vrot.slane %v5731_v60, %v5726_v54  ;;  %v3116_v24 = vsel %vm523_vm1, %v3115_v31, %v3111_v55 }
 0x48d   :  { %v3340_v18 = vrot.slane %v2780_v22, %v5725_v2  ;;  %v5732_v22 = vld [vmem:[#allocation39_spill] sm:$0xff] }
 0x48e   :  { %v3129_v17 = vrot.slane %v5732_v22, %v5726_v54 }
 0x48f   :  { %v5266_v52 = vpop.permute.xlu0 %2650  ;;  %v3341_v34 = vsel %vm523_vm1, %v3340_v18, %v3336_v27  ;;  %v3125_v27 = vsel %vm523_vm1, %v3124_v16, %v3120_v38  ;;  %v3138_v18 = vrot.slane %v5163_v50, %v5726_v54  ;;  %v5734_v38 = vld [vmem:[#allocation32_spill] sm:$0xff] }
 0x490   :  { %v3437_v59 = vsel %vm662_vm3, %v3341_v34, %v5199_v35  ;;  %v2594_v33 = vpop.permute.xlu1 %2593  ;;  %v3107_v34 = vsel %vm523_vm1, %v3106_v62, %v3102_v49 }
 0x491   :  { %v3061_v56 = vrot.slane %v2594_v33, %v5725_v2  ;;  %v3147_v33 = vrot.slane %v5266_v52, %v5726_v54 }
 0x493   :  { %v5282_v10 = vpop.permute.xlu0 %2698  ;;  %v3062_v61 = vsel %vm523_vm1, %v3061_v56, %v3057_v4  ;;  %v3415_v4 = vsel %vm660_vm2, %v3116_v24, %v3107_v34  ;;  %v3143_v56 = vsel %vm523_vm1, %v3142_v14, %v3138_v18  ;;  %v2967_v14 = vrot.slane %v5734_v38, %v5726_v54  ;;  %v5735_v24 = vld [vmem:[#allocation28_spill] sm:$0xff] }
 0x494   :  { %v5300_v63 = vsel %vm664_vm4, %v3062_v61, %v3409_v13  ;;  %v2654_v35 = vpop.permute.xlu1 %2653  ;;  %v3416_v50 = vsel %vm662_vm3, %v3125_v27, %v3415_v4  ;;  %v2962_v22 = vrot.slane %v5735_v24, %v5725_v2  ;;  %v5737_v27 = vld [vmem:[#allocation34_spill] sm:$0xff] }
 0x495   :  { %v3151_v21 = vrot.slane %v2654_v35, %v5725_v2  ;;  %v2976_v18 = vrot.slane %v5737_v27, %v5726_v54 }
 0x497   :  { %v5293_v45 = vpop.permute.xlu0 %2740  ;;  %v3152_v47 = vsel %vm523_vm1, %v3151_v21, %v3147_v33 }
 0x498   :  { %v2702_v28 = vpop.permute.xlu1 %2701 }
 0x499   :  { %v3223_v13 = vrot.slane %v2702_v28, %v5725_v2 }
 0x49b   :  { %v2783_v41 = vpop.permute.xlu0 %2782 }
 0x49c   :  { %v5304_v37 = vpop.permute.xlu1 %2743  ;;  %v3345_v23 = vrot.slane %v2783_v41, %v5726_v54 }
 0x49f   :  { %v5302_v51 = vpop.permute.xlu0 %2557 }
 0x4a0   :  { %v2786_v29 = vpop.permute.xlu1 %2785 }
 0x4a1   :  { %v3349_v40 = vrot.slane %v2786_v29, %v5725_v2 }
 0x4a3   :  { %v5306_v12 = vpop.permute.xlu0 %2599  ;;  %v3350_v48 = vsel %vm523_vm1, %v3349_v40, %v3345_v23 }
 0x4a4   :  { %v5312_v3 = vsel %vm664_vm4, %v3350_v48, %v3437_v59  ;;  %v5314_v20 = vpop.permute.xlu1 %2596  ;;  %v3134_v59 = vsel %vm523_vm1, %v3133_v19, %v3129_v17  ;;  %v5736_v17 = vld [vmem:[#allocation27_spill] sm:$0xff] }
 0x4a5   :  { %v3417_v35 = vsel %vm664_vm4, %v3134_v59, %v3416_v50  ;;  %v2980_v21 = vrot.slane %v5736_v17, %v5725_v2  ;;  %v5739_v59 = vld [vmem:[#allocation29_spill] sm:$0xff] }
 0x4a6   :  { %v3418_v40 = vsel %vm666_vm5, %v3143_v56, %v3417_v35  ;;  %v2989_v33 = vrot.slane %v5739_v59, %v5725_v2  ;;  %v3070_v59 = vrot.slane %v5306_v12, %v5725_v2 }
 0x4a7   :  { %v2660_v11 = vpop.permute.xlu0 %2659  ;;  %v3419_v28 = vsel %vm668_vm6, %v3152_v47, %v3418_v40  ;;  %v5741_v47 = vld [vmem:[#allocation31_spill] sm:$0xff] }
 0x4a8   :  { %v2657_v9 = vpop.permute.xlu1 %2656  ;;  %v3160_v5 = vrot.slane %v2660_v11, %v5725_v2  ;;  %v3219_v11 = vrot.slane %v5282_v10, %v5726_v54 }
 0x4a9   :  { %v3156_v44 = vrot.slane %v2657_v9, %v5726_v54 }
 0x4aa   :  { %v3224_v31 = vsel %vm523_vm1, %v3223_v13, %v3219_v11  ;;  %v2998_v13 = vrot.slane %v5741_v47, %v5725_v2 }
 0x4ab   :  { %v2708_v15 = vpop.permute.xlu0 %2707  ;;  %v3161_v41 = vsel %vm523_vm1, %v3160_v5, %v3156_v44  ;;  %v3426_v19 = vsel %vm668_vm6, %v3224_v31, %v5260_v58  ;;  %v5738_v44 = vld [vmem:[#allocation30_spill] sm:$0xff]  ;;  %v5743_v31 = vld [vmem:[#allocation40_spill] sm:$0xff] }
 0x4ac   :  { %v2705_v26 = vpop.permute.xlu1 %2704  ;;  %v3232_v29 = vrot.slane %v2708_v15, %v5725_v2  ;;  %v2958_v34 = vrot.slane %v5738_v44, %v5726_v54 }
 0x4ad   :  { %v3228_v52 = vrot.slane %v2705_v26, %v5726_v54  ;;  %v3420_v26 = vsel %vm670_vm7, %v3161_v41, %v3419_v28 }
 0x4af   :  { %v5316_v42 = vpop.permute.xlu0 %2749  ;;  %v3233_v39 = vsel %vm523_vm1, %v3232_v29, %v3228_v52  ;;  %v3007_v29 = vrot.slane %v5302_v51, %v5725_v2  ;;  %v2981_v52 = vsel %vm523_vm1, %v2980_v21, %v2976_v18 }
 0x4b0   :  { %v5320_v0 = vpop.permute.xlu1 %2746  ;;  %v3427_v49 = vsel %vm670_vm7, %v3233_v39, %v3426_v19 }
 0x4b3   :  { %v5318_v6 = vpop.permute.xlu0 %2791 }
 0x4b4   :  { %v5324_v57 = vpop.permute.xlu1 %2788 }
 0x4b7   :  { %v5322_v7 = vpop.permute.xlu0 %2563 }
 0x4b8   :  { %v5332_v8 = vpop.permute.xlu1 %2560 }
 0x4b9   :  { %v3012_v40 = vrot.slane %v5332_v8, %v5726_v54 }
 0x4bb   :  { %v5326_v46 = vpop.permute.xlu0 %2605 }
 0x4bc   :  { %v5355_v53 = vpop.permute.xlu1 %2602 }
 0x4bf   :  { %v2666_v30 = vpop.permute.xlu0 %2665 }
 0x4c0   :  { %v3169_v61 = vrot.slane %v2666_v30, %v5725_v2  ;;  %v2663_v23 = vpop.permute.xlu1 %2662  ;;  %v5733_v30 = vld [vmem:[#allocation25_spill] sm:$0xff] }
 0x4c1   :  { %v3165_v48 = vrot.slane %v2663_v23, %v5726_v54  ;;  %v2971_v1 = vrot.slane %v5733_v30, %v5725_v2  ;;  %v3016_v23 = vrot.slane %v5322_v7, %v5725_v2 }
 0x4c3   :  { %v2714_v25 = vpop.permute.xlu0 %2713  ;;  %v3170_v15 = vsel %vm523_vm1, %v3169_v61, %v3165_v48  ;;  %v5742_v61 = vld [vmem:[#allocation38_spill] sm:$0xff]  ;;  %v2972_v41 = vsel %vm523_vm1, %v2971_v1, %v2967_v14  ;;  %v2963_v48 = vsel %vm523_vm1, %v2962_v22, %v2958_v34  ;;  %v3286_v1 = vrot.slane %v5304_v37, %v5725_v2 }
 0x4c4   :  { %v3241_v16 = vrot.slane %v2714_v25, %v5725_v2  ;;  %v2711_v55 = vpop.permute.xlu1 %2710  ;;  %v3421_v36 = vsel %vm672_vm8, %v3170_v15, %v3420_v26  ;;  %v5740_v25 = vld [vmem:[#allocation36_spill] sm:$0xff]  ;;  %v2994_v35 = vrot.slane %v5742_v61, %v5726_v54  ;;  %v3401_v51 = vsel %vm660_vm2, %v2972_v41, %v2963_v48 }
 0x4c5   :  { %v3237_v10 = vrot.slane %v2711_v55, %v5726_v54  ;;  %v3463_v62 = vsel %vm683_vm9, %v3421_v36, 0.0  ;;  %v2985_v4 = vrot.slane %v5740_v25, %v5726_v54  ;;  %v3402_v39 = vsel %vm662_vm3, %v2981_v52, %v3401_v51 }
 0x4c6   :  { %3464 = vadd.xlane.f32.xlu0 %v3463_v62  ;;  %v2999_v26 = vsel %vm523_vm1, %v2998_v13, %v2994_v35  ;;  %v3017_v36 = vsel %vm523_vm1, %v3016_v23, %v3012_v40  ;;  %v3295_v14 = vrot.slane %v5316_v42, %v5725_v2  ;;  %v3282_v22 = vrot.slane %v5293_v45, %v5726_v54 }
 0x4c7   :  { %v5375_v9 = vpop.permute.xlu0 %2755  ;;  %v3242_v60 = vsel %vm523_vm1, %v3241_v16, %v3237_v10  ;;  %v2990_v28 = vsel %vm523_vm1, %v2989_v33, %v2985_v4  ;;  %v3003_v16 = vrot.slane %v5743_v31, %v5726_v54  ;;  %v3066_v33 = vrot.slane %v5314_v20, %v5726_v54 }
 0x4c8   :  { %v2753_v58 = vpop.permute.xlu1 %2752  ;;  %v3428_v5 = vsel %vm672_vm8, %v3242_v60, %v3427_v49  ;;  %v3403_v55 = vsel %vm664_vm4, %v2990_v28, %v3402_v39  ;;  %v3291_v60 = vrot.slane %v5320_v0, %v5726_v54  ;;  %v3304_v17 = vrot.slane %v5375_v9, %v5725_v2 }
 0x4c9   :  { %v3466_v56 = vsel %vm683_vm9, %v3428_v5, 0.0  ;;  %v3008_v7 = vsel %vm523_vm1, %v3007_v29, %v3003_v16  ;;  %v3404_v62 = vsel %vm666_vm5, %v2999_v26, %v3403_v55  ;;  %v3300_v37 = vrot.slane %v2753_v58, %v5726_v54 }
 0x4ca   :  { %3467 = vadd.xlane.f32.xlu0 %v3466_v56  ;;  %v3405_v38 = vsel %vm668_vm6, %v3008_v7, %v3404_v62  ;;  %v3287_v0 = vsel %vm523_vm1, %v3286_v1, %v3282_v22  ;;  %v3296_v5 = vsel %vm523_vm1, %v3295_v14, %v3291_v60  ;;  %v3079_v56 = vrot.slane %v5326_v46, %v5725_v2  ;;  %v5744_v60 = vld [vmem:[#allocation13_spill] sm:$0xff] }
 0x4cb   :  { %v5386_v43 = vpop.permute.xlu0 %2797  ;;  %v3406_v24 = vsel %vm670_vm7, %v3017_v36, %v3405_v38  ;;  %v3305_v45 = vsel %vm523_vm1, %v3304_v17, %v3300_v37  ;;  %v3432_v9 = vsel %vm666_vm5, %v3287_v0, %v5274_v32  ;;  %v3071_v41 = vsel %vm523_vm1, %v3070_v59, %v3066_v33  ;;  %v3793_v17 = vld [vmem:[%s5583_s3] sm:$0xf]  ;;  %v5745_v37 = vld [vmem:[#allocation11_spill] sm:$0xff] }
 0x4cc   :  { %v5422_v11 = vpop.permute.xlu1 %2794  ;;  %v3433_v25 = vsel %vm668_vm6, %v3296_v5, %v3432_v9  ;;  %v3358_v46 = vrot.slane %v5318_v6, %v5725_v2  ;;  %v3367_v52 = vrot.slane %v5386_v43, %v5725_v2 }
 0x4cd   :  { %v3434_v32 = vsel %vm670_vm7, %v3305_v45, %v3433_v25  ;;  %v3363_v23 = vrot.slane %v5422_v11, %v5726_v54 }
 0x4cf   :  { %v2570_v50 = vpop.permute.xlu0 %2569  ;;  %v3368_v11 = vsel %vm523_vm1, %v3367_v52, %v3363_v23 }
 0x4d0   :  { %v3025_v8 = vrot.slane %v2570_v50, %v5725_v2  ;;  %v2567_v10 = vpop.permute.xlu1 %2566  ;;  %v3075_v50 = vrot.slane %v5355_v53, %v5726_v54  ;;  %v3354_v53 = vrot.slane %v5324_v57, %v5726_v54  ;;  %v3411_v57 = vsel %vm666_vm5, %v3071_v41, %v5300_v63 }
 0x4d1   :  { %v3021_v19 = vrot.slane %v2567_v10, %v5726_v54 }
 0x4d2   :  { %v3080_v29 = vsel %vm523_vm1, %v3079_v56, %v3075_v50  ;;  %v3359_v43 = vsel %vm523_vm1, %v3358_v46, %v3354_v53 }
 0x4d3   :  { %v2612_v15 = vpop.permute.xlu0 %2611  ;;  %v3026_v49 = vsel %vm523_vm1, %v3025_v8, %v3021_v19  ;;  %v3412_v51 = vsel %vm668_vm6, %v3080_v29, %v3411_v57  ;;  %v3439_v63 = vsel %vm666_vm5, %v3359_v43, %v5312_v3  ;;  %v3791_v3 = vld [vmem:[%s5584_s4 + $0x48] sm:$0xff] }
 0x4d4   :  { %v2609_v21 = vpop.permute.xlu1 %2608  ;;  %v3407_v27 = vsel %vm672_vm8, %v3026_v49, %v3406_v24  ;;  %v3088_v13 = vrot.slane %v2612_v15, %v5725_v2  ;;  %v3440_v19 = vsel %vm668_vm6, %v3368_v11, %v3439_v63  ;;  %v3478_v49 = vrot.slane %v3791_v3, %v5744_v60  ;;  %v3792_v24 = vld [vmem:[%s5584_s4 + $0x98] sm:$0xff]  ;;  %v5748_v3 = vld [vmem:[#allocation19_spill] sm:$0xff] }
 0x4d5   :  { %v3457_v42 = vsel %vm683_vm9, %v3407_v27, 0.0  ;;  %v3084_v12 = vrot.slane %v2609_v21, %v5726_v54  ;;  %v3497_v22 = vrot.slane %v3792_v24, %v5744_v60  ;;  %v36_v21 = vrot.slane %v3793_v17, %v5745_v37 }
 0x4d6   :  { %3458 = vadd.xlane.f32.xlu1 %v3457_v42  ;;  %v5746_v42 = vld [vmem:[#allocation12_spill] sm:$0xff] }
 0x4d7   :  { %v2762_v30 = vpop.permute.xlu0 %2761  ;;  %v3089_v48 = vsel %vm523_vm1, %v3088_v13, %v3084_v12  ;;  %v37_v27 = vsub.f32 %v36_v21, %v3793_v17  ;;  %v5749_v21 = vld [vmem:[#allocation14_spill] sm:$0xff] }
 0x4d8   :  { %v3313_v44 = vrot.slane %v2762_v30, %v5725_v2  ;;  %v2759_v34 = vpop.permute.xlu1 %2758  ;;  %v3413_v7 = vsel %vm670_vm7, %v3089_v48, %v3412_v51 }
 0x4d9   :  { %v3309_v58 = vrot.slane %v2759_v34, %v5726_v54  ;;  %v3552_v0 = vrot.slane %v37_v27, %v5744_v60  ;;  %v3674_v60 = vmul.f32 %v5748_v3, %v5748_v3 }
 0x4db   :  { %v2804_v18 = vpop.permute.xlu0 %2803  ;;  %v3314_v47 = vsel %vm523_vm1, %v3313_v44, %v3309_v58 }
 0x4dc   :  { %v2801_v61 = vpop.permute.xlu1 %2800  ;;  %v3435_v20 = vsel %vm672_vm8, %v3314_v47, %v3434_v32  ;;  %v3376_v28 = vrot.slane %v2804_v18, %v5725_v2  ;;  %v3533_v18 = vrot.slane %v37_v27, %v5746_v42  ;;  %v3633_v27 = vadd.s32 4294967280, %v5749_v21 }
 0x4dd   :  { %v3469_v35 = vsel %vm683_vm9, %v3435_v20, 0.0  ;;  %v3372_v6 = vrot.slane %v2801_v61, %v5726_v54  ;;  %v3640_v42 = vadd.s32 4294967272, %v5749_v21 }
 0x4de   :  { %3470 = vadd.xlane.f32.xlu0 %v3469_v35 }
 0x4df   :  { %v2618_v4 = vpop.permute.xlu0 %2617  ;;  %v3377_v8 = vsel %vm523_vm1, %v3376_v28, %v3372_v6 }
 0x4e0   :  { %v3097_v40 = vrot.slane %v2618_v4, %v5725_v2  ;;  %v2615_v31 = vpop.permute.xlu1 %2614  ;;  %v3441_v1 = vsel %vm670_vm7, %v3377_v8, %v3440_v19 }
 0x4e1   :  { %v3093_v15 = vrot.slane %v2615_v31, %v5726_v54 }
 0x4e3   :  { %v2810_v16 = vpop.permute.xlu0 %2809  ;;  %v3098_v39 = vsel %vm523_vm1, %v3097_v40, %v3093_v15 }
 0x4e4   :  { %v3385_v26 = vrot.slane %v2810_v16, %v5725_v2  ;;  %v2807_v55 = vpop.permute.xlu1 %2806  ;;  %v3414_v36 = vsel %vm672_vm8, %v3098_v39, %v3413_v7 }
 0x4e5   :  { %v3381_v10 = vrot.slane %v2807_v55, %v5726_v54  ;;  %v3460_v62 = vsel %vm683_vm9, %v3414_v36, 0.0 }
 0x4e6   :  { %3461 = vadd.xlane.f32.xlu1 %v3460_v62 }
 0x4e7   :  { %v3386_v30 = vsel %vm523_vm1, %v3385_v26, %v3381_v10 }
 0x4e8   :  { %v3442_v38 = vsel %vm672_vm8, %v3386_v30, %v3441_v1  ;;  %v5747_v1 = vld [vmem:[#allocation20_spill] sm:$0xff] }
 0x4e9   :  { %v3472_v14 = vsel %vm683_vm9, %v3442_v38, 0.0  ;;  %v3675_v38 = vmul.f32 %v5747_v1, %v5747_v1 }
 0x4ea   :  { %3473 = vadd.xlane.f32.xlu0 %v3472_v14 }
 0x4f7   :  { %3480 = vbcast.lane.b32.xlu1 %v3478_v49, 256 }
 0x4fb   :  { %3499 = vbcast.lane.b32.xlu1 %v3497_v22, 256 }
 0x4ff   :  { %3503 = vbcast.lane.b32.xlu1 %v3497_v22, 264 }
 0x500   :  { %3484 = vbcast.lane.b32.xlu0 %v3478_v49, 264 }
 0x503   :  { %3488 = vbcast.lane.b32.xlu1 %v3478_v49, 272 }
 0x504   :  { %3507 = vbcast.lane.b32.xlu0 %v3497_v22, 272 }
 0x507   :  { %3492 = vbcast.lane.b32.xlu1 %v3478_v49, 280 }
 0x508   :  { %3511 = vbcast.lane.b32.xlu0 %v3497_v22, 280 }
 0x50b   :  { %3535 = vbcast.lane.b32.xlu1 %v3533_v18, 256 }
 0x50c   :  { %3539 = vbcast.lane.b32.xlu0 %v3533_v18, 264 }
 0x50f   :  { %3554 = vbcast.lane.b32.xlu1 %v3552_v0, 256 }
 0x510   :  { %3558 = vbcast.lane.b32.xlu0 %v3552_v0, 264  ;;  %v3456_v5 = vpop.xlane.xlu0 %3455 }
 0x513   :  { %3543 = vbcast.lane.b32.xlu1 %v3533_v18, 272 }
 0x514   :  { %3562 = vbcast.lane.b32.xlu0 %v3552_v0, 272 }
 0x516   :  { %v3453_v45 = vpop.xlane.xlu1 %3452 }
 0x517   :  { %3547 = vbcast.lane.b32.xlu1 %v3533_v18, 280 }
 0x518   :  { %3566 = vbcast.lane.b32.xlu0 %v3552_v0, 280 }
 0x553   :  { %v3465_v44 = vpop.xlane.xlu0 %3464 }
 0x557   :  { %v3468_v34 = vpop.xlane.xlu0 %3467 }
 0x563   :  { %v3459_v9 = vpop.xlane.xlu1 %3458 }
 0x56b   :  { %v3471_v58 = vpop.xlane.xlu0 %3470 }
 0x573   :  { %v3462_v59 = vpop.xlane.xlu1 %3461 }
 0x577   :  { %v3474_v33 = vpop.xlane.xlu0 %3473  ;;  %v3481_v25 = vpop.permute.xlu1 %3480 }
 0x578   :  { %v3521_v41 = vadd.f32 %v3481_v25, %v3453_v45 }
 0x57b   :  { %v3485_v4 = vpop.permute.xlu0 %3484  ;;  %v3500_v56 = vpop.permute.xlu1 %3499 }
 0x57c   :  { %v3522_v12 = vadd.f32 %v3485_v4, %v3456_v5  ;;  %v3525_v10 = vadd.f32 %v3500_v56, %v3465_v44  ;;  %v5750_v5 = vld [vmem:[#allocation10_spill] sm:$0xff] }
 0x57d   :  { %v3636_v44 = vsub.s32 %v3633_v27, %v5750_v5 }
 0x57f   :  { %v3508_v50 = vpop.permute.xlu0 %3507  ;;  %v3504_v47 = vpop.permute.xlu1 %3503 }
 0x580   :  { %v3526_v46 = vadd.f32 %v3504_v47, %v3468_v34  ;;  %v3527_v48 = vadd.f32 %v3508_v50, %v3471_v58  ;;  %v3643_v34 = vsub.s32 %v3640_v42, %v5750_v5 }
 0x583   :  { %v3512_v32 = vpop.permute.xlu0 %3511  ;;  %v3489_v13 = vpop.permute.xlu1 %3488 }
 0x584   :  { %v3528_v15 = vadd.f32 %v3512_v32, %v3474_v33  ;;  %v3523_v43 = vadd.f32 %v3489_v13, %v3459_v9 }
 0x587   :  { %v3540_v61 = vpop.permute.xlu0 %3539  ;;  %v3493_v20 = vpop.permute.xlu1 %3492 }
 0x588   :  { %v3577_v35 = vsub.f32 %v3522_v12, %v3540_v61  ;;  %v3524_v8 = vadd.f32 %v3493_v20, %v3462_v59  ;;  %v3703_v59 = vstv %s5580_s0 }
 0x589   :  { %vm3704_vm15 = vcmp.eq.s32.totalorder %v5749_v21, %v3703_v59 }
 0x58a   :  { %v3585_v53 = vmul.f32 %v3577_v35, %v3577_v35 }
 0x58b   :  { %v3559_v29 = vpop.permute.xlu0 %3558  ;;  %v3536_v52 = vpop.permute.xlu1 %3535 }
 0x58c   :  { %v3581_v23 = vsub.f32 %v3526_v46, %v3559_v29  ;;  %v3576_v40 = vsub.f32 %v3521_v41, %v3536_v52  ;;  %3604 = vperm.xlu0 %3789, %v3585_v53  }
 0x58e   :  { %v3589_v28 = vmul.f32 %v3581_v23, %v3581_v23  ;;  %v3584_v6 = vmul.f32 %v3576_v40, %v3576_v40 }
 0x58f   :  { %v3563_v31 = vpop.permute.xlu0 %3562  ;;  %v3555_v16 = vpop.permute.xlu1 %3554 }
 0x590   :  { %v3582_v57 = vsub.f32 %v3527_v48, %v3563_v31  ;;  %3616 = vperm.xlu0 %3789, %v3589_v28   ;;  %3601 = vperm.xlu1 %3790, %v3584_v6   ;;  %v3580_v19 = vsub.f32 %v3525_v10, %v3555_v16  ;;  %v3698_v31 = vstv %s5581_s1 }
 0x592   :  { %v3590_v51 = vmul.f32 %v3582_v57, %v3582_v57  ;;  %v3588_v14 = vmul.f32 %v3580_v19, %v3580_v19 }
 0x593   :  { %v3567_v11 = vpop.permute.xlu0 %3566  ;;  %v3544_v26 = vpop.permute.xlu1 %3543 }
 0x594   :  { %v3583_v39 = vsub.f32 %v3528_v15, %v3567_v11  ;;  %v3578_v7 = vsub.f32 %v3523_v43, %v3544_v26  ;;  %3619 = vperm.xlu0 %3789, %v3590_v51  }
 0x596   :  { %v3591_v55 = vmul.f32 %v3583_v39, %v3583_v39  ;;  %v3586_v36 = vmul.f32 %v3578_v7, %v3578_v7 }
 0x597   :  { %v3548_v63 = vpop.permute.xlu1 %3547 }
 0x598   :  { %v3579_v62 = vsub.f32 %v3524_v8, %v3548_v63  ;;  %3622 = vperm.xlu0 %3789, %v3591_v55   ;;  %3607 = vperm.xlu1 %3790, %v3586_v36  }
 0x59a   :  { %v3587_v30 = vmul.f32 %v3579_v62, %v3579_v62 }
 0x59c   :  { %3682 = vperm.xlu0 %3789, %v3675_v38   ;;  %3610 = vperm.xlu1 %3790, %v3587_v30  }
 0x5a0   :  { %3613 = vperm.xlu1 %3790, %v3588_v14  }
 0x5a4   :  { %3679 = vperm.xlu1 %3790, %v3674_v60  }
 0x60b   :  { %v3605_v49 = vpop.permute.xlu0 %3604 }
 0x60c   :  { %v3631_v33 = vrot.slane %v3605_v49, %v5725_v2 }
 0x60f   :  { %v3617_v24 = vpop.permute.xlu0 %3616  ;;  %v3602_v22 = vpop.permute.xlu1 %3601 }
 0x610   :  { %v3627_v45 = vrot.slane %v3602_v22, %v5726_v54  ;;  %v3654_v25 = vrot.slane %v3617_v24, %v5725_v2  ;;  %v3702_v2 = vld [vmem:[%s5582_s2] sm:$0x3] }
 0x611   :  { %v3705_v48 = vsel %vm3704_vm15, %v3702_v2, 0.0 }
 0x612   :  { %v3632_v32 = vsel %vm523_vm1, %v3631_v33, %v3627_v45  ;;  %v3706_v6 = vsel %vm3694_vm14, %v3705_v48, 0.0 }
 0x613   :  { %v3620_v17 = vpop.permute.xlu0 %3619 }
 0x614   :  { %v3659_v50 = vrot.slane %v3620_v17, %v3636_v44 }
 0x617   :  { %v3608_v37 = vpop.permute.xlu1 %3607  ;;  %v3623_v18 = vpop.permute.xlu0 %3622 }
 0x618   :  { %v3637_v9 = vrot.slane %v3608_v37, %v3636_v44  ;;  %v3664_v13 = vrot.slane %v3623_v18, %v3643_v34 }
 0x61a   :  { %v3639_v61 = vsel %vm3638_vm11, %v3637_v9, %v3632_v32 }
 0x61b   :  { %v3611_v0 = vpop.permute.xlu1 %3610  ;;  %v3683_v47 = vpop.permute.xlu0 %3682 }
 0x61c   :  { %v3644_v4 = vrot.slane %v3611_v0, %v3643_v34  ;;  %v3691_v41 = vrot.slane %v3683_v47, %v5726_v54 }
 0x61e   :  { %v3646_v53 = vsel %vm3645_vm12, %v3644_v4, %v3639_v61 }
 0x61f   :  { %v3614_v58 = vpop.permute.xlu1 %3613 }
 0x620   :  { %v3650_v56 = vrot.slane %v3614_v58, %v5726_v54 }
 0x622   :  { %v3655_v12 = vsel %vm523_vm1, %v3654_v25, %v3650_v56 }
 0x623   :  { %v3680_v20 = vpop.permute.xlu1 %3679  ;;  %v3660_v35 = vsel %vm3638_vm11, %v3659_v50, %v3655_v12 }
 0x624   :  { %v3687_v46 = vrot.slane %v3680_v20, %v5726_v54  ;;  %v3665_v29 = vsel %vm3645_vm12, %v3664_v13, %v3660_v35 }
 0x625   :  { %v3666_v52 = vsel %vm660_vm2, %v3665_v29, %v3646_v53 }
 0x626   :  { %v3669_v23 = vsel %vm3668_vm13, %v3666_v52, 0.0  ;;  %v3692_v40 = vsel %vm660_vm2, %v3691_v41, %v3687_v46  ;;  %vm3725_vm2 = vcmask 1041408  }
 0x627   :  { %3670 = vadd.xlane.f32.xlu1 %v3669_v23  ;;  %v3695_v28 = vsel %vm3694_vm14, %v3692_v40, 0.0 }
 0x628   :  { %3696 = vadd.xlane.f32.xlu0 %v3695_v28 }
 0x62c   :  { %3707 = vadd.xlane.f32.xlu0 %v3706_v6 }
 0x6b4   :  { %v3671_v16 = vpop.xlane.xlu1 %3670 }
 0x6b5   :  { %v3673_v57 = vmul.f32 0.03125, %v3671_v16  ;;  %v3697_v54 = vpop.xlane.xlu0 %3696 }
 0x6b6   :  { %v3699_v15 = vmul.f32 %v3698_v31, %v3697_v54 }
 0x6b8   :  { %v3700_v43 = vadd.f32 %v3699_v15, %v3673_v57 }
 0x6b9   :  { %v3708_v51 = vpop.xlane.xlu0 %3707 }
 0x6ba   :  { %v3709_v11 = vmul.f32 %v3708_v51, %v3700_v43  ;;  %vm3723_vm1 = vcmp.eq.f32.partialorder %v3700_v43, %v3700_v43 }
 0x6bb   :  { %v3724_v39 = vsel %vm3723_vm1, %v3700_v43, inf }
 0x6bc   :  { %v3711_v26 = vsel %vm3710_vm0, %v3709_v11, 0.0  ;;  %v3726_v7 = vsel %vm3725_vm2, %v3724_v39, inf }
 0x6bd   :  { %3712 = vadd.xlane.f32.xlu0 %v3711_v26  ;;  %v3727_v8 = vrot.slane %v3726_v7, 4 }
 0x6bf   :  { %v3728_v55 = vmin.f32 %v3726_v7, %v3727_v8 }
 0x6c1   :  { %v3729_v63 = vrot.slane %v3728_v55, 2 }
 0x6c3   :  { %v3730_v19 = vmin.f32 %v3728_v55, %v3729_v63 }
 0x6c5   :  { %v3731_v38 = vrot.slane %v3730_v19, 1 }
 0x6c7   :  { %v3732_v60 = vmin.f32 %v3730_v19, %v3731_v38 }
 0x74a   :  { %v3713_v36 = vpop.xlane.xlu0 %3712 }
 0x74b   :  { %v3714_v10 = vrot.slane %v3713_v36, 4 }
 0x74d   :  { %v3715_v62 = vadd.f32 %v3714_v10, %v3713_v36 }
 0x74f   :  { %v3716_v30 = vrot.slane %v3715_v62, 2 }
 0x751   :  { %v3717_v1 = vadd.f32 %v3716_v30, %v3715_v62 }
 0x753   :  { %v3718_v14 = vrot.slane %v3717_v1, 1 }
 0x755   :  { %v3719_v3 = vadd.f32 %v3718_v14, %v3717_v1 }
 0x757   :  { %3779 = vpush %v3719_v3 }
 0x758   :  { %3781 = vpush %v3732_v60 }
 0x788   :  { %s3780_s1 = spop %3779 }
 0x789   :  { %s3782_s23 = spop %3781  ;;  %3722 = sst [smem:[#allocation4]] %s3780_s1 }
 0x78a   :  { %v3736_v49 = vstv %s3782_s23 }
 0x78b   :  { %vm3737_vm3 = vcmp.eq.f32.partialorder %v3724_v39, %v3736_v49 }
 0x78c   :  { %3803 = shalt.err (!%p3800_p2)
}
 0x78d   :  { %s3820_s7 = smov [#allocation4]   ;;  %v3738_v24 = vsel %vm3737_vm3, %v5750_v5, 2  ;;  %p3750_p3 = scmp.lt.f32.partialorder %s3782_s23, inf }
 0x78e   :  { %3761 = dma.smem_to_hbm %s3820_s7, 16, %s5585_s5, [#allocation5]   ;;  %v3739_v22 = vsel %vm3725_vm2, %v3738_v24, 2147483647 }
 0x78f   :  { %v3740_v17 = vrot.slane %v3739_v22, 4  ;;  %s3804_s12 = scalar_lea.hbm %s5586_s6, 16 }
 0x790   :  { %p3805_p4 = scmp.ne.s32.totalorder %s5586_s6, %s3804_s12  ;;  %p3808_p5 = scmp.lt.u32.totalorder %s3804_s12, %s5586_s6 }
 0x791   :  { %vm3741_vm4 = vcmp.lt.s32.totalorder %v3739_v22, %v3740_v17 }
 0x792   :  { %v3742_v37 = vsel %vm3741_vm4, %v3739_v22, %v3740_v17  ;;  %p3810_p6 = pnand %p3808_p5, %p3805_p4 }
 0x793   :  { %v3743_v21 = vrot.slane %v3742_v37, 2 }
 0x795   :  { %vm3744_vm5 = vcmp.lt.s32.totalorder %v3742_v37, %v3743_v21 }
 0x796   :  { %v3745_v27 = vsel %vm3744_vm5, %v3742_v37, %v3743_v21 }
 0x797   :  { %v3746_v42 = vrot.slane %v3745_v27, 1 }
 0x799   :  { %vm3747_vm6 = vcmp.lt.s32.totalorder %v3745_v27, %v3746_v42 }
 0x79a   :  { %v3748_v18 = vsel %vm3747_vm6, %v3745_v27, %v3746_v42 }
 0x79b   :  { %3783 = vpush %v3748_v18 }
 0x7cc   :  { %s3784_s10 = spop %3783 }
 0x7cd   :  { %s5752_s10 = smov (!%p3750_p3, %s3784_s10), 4294967295 }
 0x7ce   :  { %3753 = sst [smem:[#allocation6]] %s5752_s10 }
 0x7cf   :  { %3813 = shalt.err (!%p3810_p6)
}
 0x7d0   :  { %s3821_s17 = smov [#allocation6]  }
 0x7d1   :  { %3769 = dma.smem_to_hbm %s3821_s17, 16, %s5586_s6, [#allocation7]  }
 0x7d2   :  { %3814 = dma.done.wait [#allocation5], 16  }
 0x7d3   :  { %3815 = vsyncadd [#allocation5], 4294967280 }
 0x7d4   :  { %3816 = dma.done.wait [#allocation7], 16  }
 0x7d5   :  { %3817 = vsyncadd [#allocation7], 4294967280 }
 0x7d6   :  { %3776 = sfence }
 0x7d7   :  { %3777 = vsyncpa [#allocation5], 1 }
 0x7d8   :  { %3778 = vsyncpa [#allocation7], 1 }

</bundles_post_ra>
